<compile_context>
chip_gen: v5e
topology: v5e:2x2
jax: 0.10.0
libtpu: 0.0.40
codegen_flags: <defaults>
</compile_context>

<pallas_src>
import functools

import jax
import jax.numpy as jnp
from jax import lax
from jax.experimental import pallas as pl
from jax.experimental.pallas import tpu as pltpu


# ---------------------------------------------------------------------------
# XLA glue: bilinear x2 upsample (align_corners=True) in NCHW.
# ---------------------------------------------------------------------------
def upsample_bilinear_x2_align_corners(x):
    # x: (N, C, H, W) -> (N, C, 2H, 2W); matches
    # F.upsample(scale_factor=2, mode='bilinear', align_corners=True).
    N, C, H, W = x.shape
    Ho, Wo = 2 * H, 2 * W

    def coords(n_in, n_out):
        if n_in == 1:
            z = jnp.zeros((n_out,), jnp.int32)
            return z, z, jnp.zeros((n_out,), jnp.float32)
        src = jnp.arange(n_out, dtype=jnp.float32) * (n_in - 1) / (n_out - 1)
        i0 = jnp.clip(jnp.floor(src).astype(jnp.int32), 0, n_in - 1)
        i1 = jnp.clip(i0 + 1, 0, n_in - 1)
        return i0, i1, src - i0.astype(jnp.float32)

    y0, y1, fy = coords(H, Ho)
    x0, x1, fx = coords(W, Wo)
    fy_ = fy[None, None, :, None]
    rows = x[:, :, y0, :] * (1.0 - fy_) + x[:, :, y1, :] * fy_
    return rows[:, :, :, x0] * (1.0 - fx) + rows[:, :, :, x1] * fx


# ---------------------------------------------------------------------------
# Fused Pallas kernel: conv3x3+BN+ReLU -> conv3x3+BN+ReLU -> scSE, per image.
# All tensors are (channels, H*W): channels on sublanes, spatial on lanes.
# ---------------------------------------------------------------------------
_OFFSETS = ((-1, -1), (-1, 0), (-1, 1),
            (0, -1), (0, 0), (0, 1),
            (1, -1), (1, 0), (1, 1))


def _decoder_kernel(H, W, tap_dtype, has_skip, *refs):
    if has_skip:
        (x_ref, z_ref, w1x_ref, w1z_ref, s1_ref, b1_ref,
         w2_ref, s2_ref, b2_ref,
         fc1w_ref, fc1b_ref, fc2w_ref, fc2b_ref, fc3w_ref, fc3b_ref,
         o_ref) = refs
    else:
        (x_ref, w1x_ref, s1_ref, b1_ref,
         w2_ref, s2_ref, b2_ref,
         fc1w_ref, fc1b_ref, fc2w_ref, fc2b_ref, fc3w_ref, fc3b_ref,
         o_ref) = refs
        z_ref = w1z_ref = None

    HW = H * W

    # ---- boundary masks for the 3x3/pad-1 taps: built ONCE, reused twice ----
    cols = lax.broadcasted_iota(jnp.int32, (1, HW), 1)      # flattened position
    xcol = cols % W                                          # column within row
    not_top = cols >= W
    not_bot = cols < HW - W
    not_left = xcol >= 1
    not_right = xcol <= W - 2

    tap_masks = []
    for dy, dx in _OFFSETS:
        m = None
        row_c = not_top if dy == -1 else (not_bot if dy == 1 else None)
        col_c = not_left if dx == -1 else (not_right if dx == 1 else None)
        for cond in (row_c, col_c):
            if cond is not None:
                m = cond if m is None else jnp.logical_and(m, cond)
        tap_masks.append(m)

    def taps_from(v):
        # v: (C, HW) in tap_dtype  ->  (9*C, HW) bf16 tap matrix.
        # Each tap is an XLU lane roll of the flattened image; the rows/cols
        # that would fall outside the zero padding (and the circular-wrap
        # lanes of the roll) are masked to 0.
        parts = []
        for (dy, dx), m in zip(_OFFSETS, tap_masks):
            shift = (-(dy * W + dx)) % HW
            t = pltpu.roll(v, shift, axis=1) if shift != 0 else v
            if m is not None:
                t = jnp.where(m, t, jnp.zeros_like(t))
            parts.append(t)
        return jnp.concatenate(parts, axis=0).astype(jnp.bfloat16)

    def sigmoid(v):
        # exp + reciprocal both live on the EUP; approx vrcp is plenty accurate.
        return pl.reciprocal(1.0 + jnp.exp(-v), approx=True)

    # ---- conv1 (3x3, pad 1) + folded BN + ReLU ----
    # One bf16 MXU matmul per channel group (x_up, skip), f32 accumulation.
    acc = jnp.dot(w1x_ref[...], taps_from(x_ref[0].astype(tap_dtype)),
                  preferred_element_type=jnp.float32)        # (C1, HW) f32
    if has_skip:
        acc = acc + jnp.dot(w1z_ref[...], taps_from(z_ref[0].astype(tap_dtype)),
                            preferred_element_type=jnp.float32)
    h1 = jnp.maximum(acc * s1_ref[...] + b1_ref[...], 0.0)

    # ---- conv2 + folded BN + ReLU, straight from VMEM ----
    h2 = jnp.dot(w2_ref[...], taps_from(h1.astype(tap_dtype)),
                 preferred_element_type=jnp.float32)          # (C2, HW) f32
    h2 = jnp.maximum(h2 * s2_ref[...] + b2_ref[...], 0.0)

    # ---- scSE (f32 epilogue) ----
    # channel gate: global average pool (lane reduce) -> fc1 -> relu -> fc2.
    zc = jnp.mean(h2, axis=1, keepdims=True)                  # (C2, 1)
    t = jnp.dot(fc1w_ref[...], zc, preferred_element_type=jnp.float32)
    t = jnp.maximum(t + fc1b_ref[...], 0.0)                   # (R, 1)
    g1 = sigmoid(jnp.dot(fc2w_ref[...], t,
                         preferred_element_type=jnp.float32) + fc2b_ref[...])
    # spatial gate: 1x1 conv as a (1,C2)x(C2,HW) MXU contraction (MXU is idle).
    g2 = sigmoid(jnp.dot(fc3w_ref[...], h2,
                         preferred_element_type=jnp.float32) + fc3b_ref[...])

    # g1*x + g2*x == (g1 + g2) * x, all lane-dense elementwise; store bf16.
    o_ref[0] = ((g1 + g2) * h2).astype(o_ref.dtype)


def decoder_forward(params, x_nchw, z_nchw=None):
    x_up = upsample_bilinear_x2_align_corners(x_nchw)
    N, Cx, H, W = x_up.shape
    HW = H * W
    has_skip = z_nchw is not None

    C1 = params['w1'].shape[-1]
    C2 = params['w2'].shape[-1]
    R = params['fc1_w'].shape[-1]
    Cin = params['w1'].shape[2]

    # Per-generation knobs: v5e/v4 have no bf16 VALU -> keep tap masking in f32
    # and cast to bf16 only right before the dot; v6e/v7x roll+mask fully in
    # bf16.  v7x has only 64 MiB VMEM -> cap the scoped limit lower.
    kind = jax.devices()[0].device_kind.lower()
    bf16_valu = ("v6" in kind) or ("v7" in kind) or ("7x" in kind)
    tap_dtype = jnp.bfloat16 if bf16_valu else jnp.float32
    if ("v7" in kind) or ("7x" in kind):
        vmem_limit = 48 * 1024 * 1024
    else:
        vmem_limit = 100 * 1024 * 1024

    # bf16 activations on the HBM/MXU path; f32 epilogue params.
    xt = x_up.reshape(N, Cx, HW).astype(jnp.bfloat16)

    # (3,3,Cin,Cout) -> (Cout, ky, kx, cin); row order matches the in-kernel
    # tap order ((dy,dx) outer, channel inner).  Split along cin so x_up and
    # the skip never get concatenated in HBM.
    w1_rows = jnp.transpose(params['w1'], (3, 0, 1, 2))      # (C1, 3, 3, Cin)
    w2t = jnp.transpose(params['w2'], (3, 0, 1, 2)).reshape(C2, 9 * C1)
    w2t = w2t.astype(jnp.bfloat16)

    s1 = params['bn1_scale'].reshape(C1, 1)
    b1 = params['bn1_bias'].reshape(C1, 1)
    s2 = params['bn2_scale'].reshape(C2, 1)
    b2 = params['bn2_bias'].reshape(C2, 1)
    fc1w = params['fc1_w'].T                                  # (R, C2)
    fc1b = params['fc1_b'].reshape(R, 1)
    fc2w = params['fc2_w'].T                                  # (C2, R)
    fc2b = params['fc2_b'].reshape(C2, 1)
    fc3w = params['fc3_w'].T                                  # (1, C2)
    fc3b = params['fc3_b'].reshape(1, 1)

    def const_spec(shape):
        nd = len(shape)
        return pl.BlockSpec(shape, lambda n, _nd=nd: (0,) * _nd)

    if has_skip:
        Nz, Cz, Hz, Wz = z_nchw.shape
        assert (Nz, Hz, Wz) == (N, H, W), (z_nchw.shape, x_up.shape)
        assert Cx + Cz == Cin
        zt = z_nchw.reshape(N, Cz, HW).astype(jnp.bfloat16)
        w1x = w1_rows[..., :Cx].reshape(C1, 9 * Cx).astype(jnp.bfloat16)
        w1z = w1_rows[..., Cx:].reshape(C1, 9 * Cz).astype(jnp.bfloat16)
        args = (xt, zt, w1x, w1z, s1, b1, w2t, s2, b2,
                fc1w, fc1b, fc2w, fc2b, fc3w, fc3b)
        in_specs = [
            pl.BlockSpec((1, Cx, HW), lambda n: (n, 0, 0)),
            pl.BlockSpec((1, Cz, HW), lambda n: (n, 0, 0)),
            const_spec((C1, 9 * Cx)), const_spec((C1, 9 * Cz)),
            const_spec((C1, 1)), const_spec((C1, 1)),
            const_spec((C2, 9 * C1)), const_spec((C2, 1)), const_spec((C2, 1)),
            const_spec((R, C2)), const_spec((R, 1)),
            const_spec((C2, R)), const_spec((C2, 1)),
            const_spec((1, C2)), const_spec((1, 1)),
        ]
    else:
        assert Cx == Cin
        w1x = w1_rows.reshape(C1, 9 * Cin).astype(jnp.bfloat16)
        args = (xt, w1x, s1, b1, w2t, s2, b2,
                fc1w, fc1b, fc2w, fc2b, fc3w, fc3b)
        in_specs = [
            pl.BlockSpec((1, Cx, HW), lambda n: (n, 0, 0)),
            const_spec((C1, 9 * Cin)),
            const_spec((C1, 1)), const_spec((C1, 1)),
            const_spec((C2, 9 * C1)), const_spec((C2, 1)), const_spec((C2, 1)),
            const_spec((R, C2)), const_spec((R, 1)),
            const_spec((C2, R)), const_spec((C2, 1)),
            const_spec((1, C2)), const_spec((1, 1)),
        ]

    out = pl.pallas_call(
        functools.partial(_decoder_kernel, H, W, tap_dtype, has_skip),
        out_shape=jax.ShapeDtypeStruct((N, C2, HW), jnp.bfloat16),
        grid=(N,),
        in_specs=in_specs,
        out_specs=pl.BlockSpec((1, C2, HW), lambda n: (n, 0, 0)),
        compiler_params=pltpu.CompilerParams(
            dimension_semantics=("parallel",),
            vmem_limit_bytes=vmem_limit),
    )(*args)
    return out.reshape(N, C2, H, W)


# ---------------------------------------------------------------------------
# Pure-JAX reference (same bf16 MXU-input / f32-accum convention).
# ---------------------------------------------------------------------------
def decoder_reference(params, x_nchw, z_nchw=None):
    x = upsample_bilinear_x2_align_corners(x_nchw)
    if z_nchw is not None:
        x = jnp.concatenate([x, z_nchw], axis=1)

    def conv_bn_relu(h, w_hwio, scale, bias):
        w = jnp.transpose(w_hwio, (3, 2, 0, 1)).astype(jnp.bfloat16)
        y = lax.conv_general_dilated(
            h.astype(jnp.bfloat16), w, (1, 1), ((1, 1), (1, 1)),
            dimension_numbers=('NCHW', 'OIHW', 'NCHW'),
            preferred_element_type=jnp.float32)
        return jnp.maximum(y * scale[None, :, None, None]
                           + bias[None, :, None, None], 0.0)

    h = conv_bn_relu(x, params['w1'], params['bn1_scale'], params['bn1_bias'])
    h = conv_bn_relu(h, params['w2'], params['bn2_scale'], params['bn2_bias'])

    z1 = jnp.mean(h, axis=(2, 3), keepdims=True)
    t = jnp.maximum(jnp.einsum('ncij,cr->nrij', z1, params['fc1_w'])
                    + params['fc1_b'][None, :, None, None], 0.0)
    g1 = jax.nn.sigmoid(jnp.einsum('nrij,rc->ncij', t, params['fc2_w'])
                        + params['fc2_b'][None, :, None, None])
    g2 = jax.nn.sigmoid(jnp.einsum('nchw,co->nohw', h, params['fc3_w'])
                        + params['fc3_b'][None, :, None, None])
    return g1 * h + g2 * h


# ---------------------------------------------------------------------------
# Deterministic parameter initialization (shapes from Decoder.__init__)
# ---------------------------------------------------------------------------
def init_params(key, in_channels, channels, out_channels, reduction=16):
    keys = jax.random.split(key, 10)
    eps = 1e-5

    def conv_w(k, cin, cout):
        return jax.random.normal(k, (3, 3, cin, cout), jnp.float32) / jnp.sqrt(9.0 * cin)

    def bn_affine(k, c):
        k1, k2, k3, k4 = jax.random.split(k, 4)
        gamma = 1.0 + 0.1 * jax.random.normal(k1, (c,), jnp.float32)
        beta = 0.1 * jax.random.normal(k2, (c,), jnp.float32)
        mean = 0.05 * jax.random.normal(k3, (c,), jnp.float32)
        var = 1.0 + 0.1 * jax.random.uniform(k4, (c,), jnp.float32)
        scale = gamma / jnp.sqrt(var + eps)
        return scale, beta - mean * scale

    def dense(k, cin, cout):
        return jax.random.normal(k, (cin, cout), jnp.float32) / jnp.sqrt(cin)

    bn1_scale, bn1_bias = bn_affine(keys[2], channels)
    bn2_scale, bn2_bias = bn_affine(keys[3], out_channels)

    return dict(
        w1=conv_w(keys[0], in_channels, channels),
        w2=conv_w(keys[1], channels, out_channels),
        bn1_scale=bn1_scale, bn1_bias=bn1_bias,
        bn2_scale=bn2_scale, bn2_bias=bn2_bias,
        fc1_w=dense(keys[4], out_channels, reduction),
        fc1_b=0.1 * jax.random.normal(keys[5], (reduction,), jnp.float32),
        fc2_w=dense(keys[6], reduction, out_channels),
        fc2_b=0.1 * jax.random.normal(keys[7], (out_channels,), jnp.float32),
        fc3_w=dense(keys[8], out_channels, 1),
        fc3_b=0.1 * jax.random.normal(keys[9], (1,), jnp.float32),
    )


if __name__ == "__main__":
    key = jax.random.PRNGKey(0)
    k_x, k_z, k_p = jax.random.split(key, 3)

    N, Cx, H, W = 2, 4, 8, 8          # low-res feature map (upsampled to 16x16)
    Cz = 4                            # skip connection channels (at 2H x 2W)
    in_channels, channels, out_channels = Cx + Cz, 16, 8

    x = jax.random.normal(k_x, (N, Cx, H, W), jnp.float32)
    z = jax.random.normal(k_z, (N, Cz, 2 * H, 2 * W), jnp.float32)
    params = init_params(k_p, in_channels, channels, out_channels)

    fwd = jax.jit(decoder_forward)
    out = jax.block_until_ready(fwd(params, x, z))
    assert out.shape == (N, out_channels, 2 * H, 2 * W), out.shape

    ref = decoder_reference(params, x, z)
    out_f32 = out.astype(jnp.float32)
    max_err = float(jnp.max(jnp.abs(out_f32 - ref)))
    scale = 1.0 + float(jnp.max(jnp.abs(ref)))
    # bf16 MXU inputs, bf16 output store, and approximate-reciprocal sigmoids
    # => loose tolerance; any logic error (wrong tap/roll/mask/weight split)
    # would show up as an O(1) mismatch.
    if max_err > 3e-2 * scale:
        raise AssertionError(f"Pallas kernel mismatch vs reference: {max_err}")

    print("KERNEL_OK")
</pallas_src>

<mosaic_0001>
module attributes {stable_mosaic.version = 11 : i64} {
  func.func @_decoder_kernel(%arg0: i32, %arg1: memref<1x4x256xbf16, #tpu.memory_space<vmem>>, %arg2: memref<1x4x256xbf16, #tpu.memory_space<vmem>>, %arg3: memref<16x36xbf16, #tpu.memory_space<vmem>>, %arg4: memref<16x36xbf16, #tpu.memory_space<vmem>>, %arg5: memref<16x1xf32, #tpu.memory_space<vmem>>, %arg6: memref<16x1xf32, #tpu.memory_space<vmem>>, %arg7: memref<8x144xbf16, #tpu.memory_space<vmem>>, %arg8: memref<8x1xf32, #tpu.memory_space<vmem>>, %arg9: memref<8x1xf32, #tpu.memory_space<vmem>>, %arg10: memref<16x8xf32, #tpu.memory_space<vmem>>, %arg11: memref<16x1xf32, #tpu.memory_space<vmem>>, %arg12: memref<8x16xf32, #tpu.memory_space<vmem>>, %arg13: memref<8x1xf32, #tpu.memory_space<vmem>>, %arg14: memref<1x8xf32, #tpu.memory_space<vmem>>, %arg15: memref<1x1xf32, #tpu.memory_space<vmem>>, %arg16: memref<1x8x256xbf16, #tpu.memory_space<vmem>>) attributes {dimension_semantics = [#tpu.dimension_semantics<parallel>], iteration_bounds = array<i64: 2>, scalar_prefetch = 0 : i64, scratch_operands = 0 : i64, tpu.core_type = #tpu.core_type<tc>, window_params = [{transform_indices = @transform_0, window_bounds = array<i64: 1, 4, 256>}, {transform_indices = @transform_1, window_bounds = array<i64: 1, 4, 256>}, {pipeline_mode = #tpu.pipeline_mode<synchronous>, transform_indices = @transform_2, window_bounds = array<i64: 16, 36>}, {pipeline_mode = #tpu.pipeline_mode<synchronous>, transform_indices = @transform_3, window_bounds = array<i64: 16, 36>}, {pipeline_mode = #tpu.pipeline_mode<synchronous>, transform_indices = @transform_4, window_bounds = array<i64: 16, 1>}, {pipeline_mode = #tpu.pipeline_mode<synchronous>, transform_indices = @transform_5, window_bounds = array<i64: 16, 1>}, {pipeline_mode = #tpu.pipeline_mode<synchronous>, transform_indices = @transform_6, window_bounds = array<i64: 8, 144>}, {pipeline_mode = #tpu.pipeline_mode<synchronous>, transform_indices = @transform_7, window_bounds = array<i64: 8, 1>}, {pipeline_mode = #tpu.pipeline_mode<synchronous>, transform_indices = @transform_8, window_bounds = array<i64: 8, 1>}, {pipeline_mode = #tpu.pipeline_mode<synchronous>, transform_indices = @transform_9, window_bounds = array<i64: 16, 8>}, {pipeline_mode = #tpu.pipeline_mode<synchronous>, transform_indices = @transform_10, window_bounds = array<i64: 16, 1>}, {pipeline_mode = #tpu.pipeline_mode<synchronous>, transform_indices = @transform_11, window_bounds = array<i64: 8, 16>}, {pipeline_mode = #tpu.pipeline_mode<synchronous>, transform_indices = @transform_12, window_bounds = array<i64: 8, 1>}, {pipeline_mode = #tpu.pipeline_mode<synchronous>, transform_indices = @transform_13, window_bounds = array<i64: 1, 8>}, {pipeline_mode = #tpu.pipeline_mode<synchronous>, transform_indices = @transform_14, window_bounds = array<i64: 1, 1>}, {transform_indices = @transform_15, window_bounds = array<i64: 1, 8, 256>}]} {
    %0 = tpu.iota {dimensions = array<i32: 1>} : vector<1x256xi32>
    %c16_i32 = arith.constant 16 : i32
    %c0_i32 = arith.constant 0 : i32
    %1 = arith.cmpi eq, %c16_i32, %c0_i32 : i32
    %c1_i32 = arith.constant 1 : i32
    %2 = arith.select %1, %c1_i32, %c16_i32 : i32
    %3 = vector.broadcast %2 : i32 to vector<1x256xi32>
    %4 = arith.remsi %0, %3 : vector<1x256xi32>
    %c0_i32_0 = arith.constant 0 : i32
    %5 = vector.broadcast %c0_i32_0 : i32 to vector<1x256xi32>
    %6 = arith.cmpi ne, %4, %5 : vector<1x256xi32>
    %c0_i32_1 = arith.constant 0 : i32
    %7 = vector.broadcast %c0_i32_1 : i32 to vector<1x256xi32>
    %8 = arith.cmpi slt, %4, %7 : vector<1x256xi32>
    %c0_i32_2 = arith.constant 0 : i32
    %9 = arith.cmpi slt, %2, %c0_i32_2 : i32
    %10 = vector.broadcast %9 : i1 to vector<1x256xi1>
    %11 = vector.broadcast %10 : vector<1x256xi1> to vector<1x256xi1>
    %12 = arith.xori %8, %11 : vector<1x256xi1>
    %13 = arith.andi %12, %6 : vector<1x256xi1>
    %14 = vector.broadcast %2 : i32 to vector<1x256xi32>
    %15 = arith.addi %4, %14 : vector<1x256xi32>
    %16 = arith.select %13, %15, %4 : vector<1x256xi1>, vector<1x256xi32>
    %c16_i32_3 = arith.constant 16 : i32
    %17 = vector.broadcast %c16_i32_3 : i32 to vector<1x256xi32>
    %18 = arith.cmpi sge, %0, %17 : vector<1x256xi32>
    %c240_i32 = arith.constant 240 : i32
    %19 = vector.broadcast %c240_i32 : i32 to vector<1x256xi32>
    %20 = arith.cmpi slt, %0, %19 : vector<1x256xi32>
    %c1_i32_4 = arith.constant 1 : i32
    %21 = vector.broadcast %c1_i32_4 : i32 to vector<1x256xi32>
    %22 = arith.cmpi sge, %16, %21 : vector<1x256xi32>
    %c14_i32 = arith.constant 14 : i32
    %23 = vector.broadcast %c14_i32 : i32 to vector<1x256xi32>
    %24 = arith.cmpi sle, %16, %23 : vector<1x256xi32>
    %25 = arith.andi %18, %22 : vector<1x256xi1>
    %26 = arith.andi %18, %24 : vector<1x256xi1>
    %27 = arith.andi %20, %22 : vector<1x256xi1>
    %28 = arith.andi %20, %24 : vector<1x256xi1>
    %c0 = arith.constant 0 : index
    %c0_5 = arith.constant 0 : index
    %29 = vector.load %arg3[%c0, %c0_5] : memref<16x36xbf16, #tpu.memory_space<vmem>>, vector<16x36xbf16>
    %c0_6 = arith.constant 0 : index
    %c0_7 = arith.constant 0 : index
    %c0_8 = arith.constant 0 : index
    %30 = vector.load %arg1[%c0_6, %c0_7, %c0_8] : memref<1x4x256xbf16, #tpu.memory_space<vmem>>, vector<1x4x256xbf16>
    %31 = vector.shape_cast %30 : vector<1x4x256xbf16> to vector<4x256xbf16>
    %32 = arith.extf %31 : vector<4x256xbf16> to vector<4x256xf32>
    %c17_i32 = arith.constant 17 : i32
    %33 = tpu.dynamic_rotate %32 by %c17_i32 dim 1 : vector<4x256xf32>, i32 -> vector<4x256xf32>
    %cst = arith.constant 0.000000e+00 : f32
    %34 = vector.broadcast %cst : f32 to vector<4x256xf32>
    %35 = vector.shape_cast %25 : vector<1x256xi1> to vector<1x256xi1>
    %36 = vector.broadcast %35 : vector<1x256xi1> to vector<4x256xi1>
    %37 = arith.select %36, %33, %34 : vector<4x256xi1>, vector<4x256xf32>
    %c16_i32_9 = arith.constant 16 : i32
    %38 = tpu.dynamic_rotate %32 by %c16_i32_9 dim 1 : vector<4x256xf32>, i32 -> vector<4x256xf32>
    %cst_10 = arith.constant 0.000000e+00 : f32
    %39 = vector.broadcast %cst_10 : f32 to vector<4x256xf32>
    %40 = vector.shape_cast %18 : vector<1x256xi1> to vector<1x256xi1>
    %41 = vector.broadcast %40 : vector<1x256xi1> to vector<4x256xi1>
    %42 = arith.select %41, %38, %39 : vector<4x256xi1>, vector<4x256xf32>
    %c15_i32 = arith.constant 15 : i32
    %43 = tpu.dynamic_rotate %32 by %c15_i32 dim 1 : vector<4x256xf32>, i32 -> vector<4x256xf32>
    %cst_11 = arith.constant 0.000000e+00 : f32
    %44 = vector.broadcast %cst_11 : f32 to vector<4x256xf32>
    %45 = vector.shape_cast %26 : vector<1x256xi1> to vector<1x256xi1>
    %46 = vector.broadcast %45 : vector<1x256xi1> to vector<4x256xi1>
    %47 = arith.select %46, %43, %44 : vector<4x256xi1>, vector<4x256xf32>
    %c1_i32_12 = arith.constant 1 : i32
    %48 = tpu.dynamic_rotate %32 by %c1_i32_12 dim 1 : vector<4x256xf32>, i32 -> vector<4x256xf32>
    %cst_13 = arith.constant 0.000000e+00 : f32
    %49 = vector.broadcast %cst_13 : f32 to vector<4x256xf32>
    %50 = vector.shape_cast %22 : vector<1x256xi1> to vector<1x256xi1>
    %51 = vector.broadcast %50 : vector<1x256xi1> to vector<4x256xi1>
    %52 = arith.select %51, %48, %49 : vector<4x256xi1>, vector<4x256xf32>
    %c255_i32 = arith.constant 255 : i32
    %53 = tpu.dynamic_rotate %32 by %c255_i32 dim 1 : vector<4x256xf32>, i32 -> vector<4x256xf32>
    %cst_14 = arith.constant 0.000000e+00 : f32
    %54 = vector.broadcast %cst_14 : f32 to vector<4x256xf32>
    %55 = vector.shape_cast %24 : vector<1x256xi1> to vector<1x256xi1>
    %56 = vector.broadcast %55 : vector<1x256xi1> to vector<4x256xi1>
    %57 = arith.select %56, %53, %54 : vector<4x256xi1>, vector<4x256xf32>
    %c241_i32 = arith.constant 241 : i32
    %58 = tpu.dynamic_rotate %32 by %c241_i32 dim 1 : vector<4x256xf32>, i32 -> vector<4x256xf32>
    %cst_15 = arith.constant 0.000000e+00 : f32
    %59 = vector.broadcast %cst_15 : f32 to vector<4x256xf32>
    %60 = vector.shape_cast %27 : vector<1x256xi1> to vector<1x256xi1>
    %61 = vector.broadcast %60 : vector<1x256xi1> to vector<4x256xi1>
    %62 = arith.select %61, %58, %59 : vector<4x256xi1>, vector<4x256xf32>
    %c240_i32_16 = arith.constant 240 : i32
    %63 = tpu.dynamic_rotate %32 by %c240_i32_16 dim 1 : vector<4x256xf32>, i32 -> vector<4x256xf32>
    %cst_17 = arith.constant 0.000000e+00 : f32
    %64 = vector.broadcast %cst_17 : f32 to vector<4x256xf32>
    %65 = vector.shape_cast %20 : vector<1x256xi1> to vector<1x256xi1>
    %66 = vector.broadcast %65 : vector<1x256xi1> to vector<4x256xi1>
    %67 = arith.select %66, %63, %64 : vector<4x256xi1>, vector<4x256xf32>
    %c239_i32 = arith.constant 239 : i32
    %68 = tpu.dynamic_rotate %32 by %c239_i32 dim 1 : vector<4x256xf32>, i32 -> vector<4x256xf32>
    %cst_18 = arith.constant 0.000000e+00 : f32
    %69 = vector.broadcast %cst_18 : f32 to vector<4x256xf32>
    %70 = vector.shape_cast %28 : vector<1x256xi1> to vector<1x256xi1>
    %71 = vector.broadcast %70 : vector<1x256xi1> to vector<4x256xi1>
    %72 = arith.select %71, %68, %69 : vector<4x256xi1>, vector<4x256xf32>
    %73 = tpu.concatenate %37, %42, %47, %52, %32, %57, %62, %67, %72 in 0 : vector<4x256xf32>, vector<4x256xf32>, vector<4x256xf32>, vector<4x256xf32>, vector<4x256xf32>, vector<4x256xf32>, vector<4x256xf32>, vector<4x256xf32>, vector<4x256xf32> -> vector<36x256xf32>
    %74 = arith.truncf %73 : vector<36x256xf32> to vector<36x256xbf16>
    %cst_19 = arith.constant dense<0.000000e+00> : vector<16x256xf32>
    %75 = tpu.matmul %29, %74, %cst_19 {dimension_numbers = #tpu.dot_dimension_numbers<[1], [0], [0], [1], [0, 0, 1, 1], [], []>} : vector<16x36xbf16>, vector<36x256xbf16>, vector<16x256xf32> -> vector<16x256xf32>
    %c0_20 = arith.constant 0 : index
    %c0_21 = arith.constant 0 : index
    %76 = vector.load %arg4[%c0_20, %c0_21] : memref<16x36xbf16, #tpu.memory_space<vmem>>, vector<16x36xbf16>
    %c0_22 = arith.constant 0 : index
    %c0_23 = arith.constant 0 : index
    %c0_24 = arith.constant 0 : index
    %77 = vector.load %arg2[%c0_22, %c0_23, %c0_24] : memref<1x4x256xbf16, #tpu.memory_space<vmem>>, vector<1x4x256xbf16>
    %78 = vector.shape_cast %77 : vector<1x4x256xbf16> to vector<4x256xbf16>
    %79 = arith.extf %78 : vector<4x256xbf16> to vector<4x256xf32>
    %c17_i32_25 = arith.constant 17 : i32
    %80 = tpu.dynamic_rotate %79 by %c17_i32_25 dim 1 : vector<4x256xf32>, i32 -> vector<4x256xf32>
    %cst_26 = arith.constant 0.000000e+00 : f32
    %81 = vector.broadcast %cst_26 : f32 to vector<4x256xf32>
    %82 = vector.shape_cast %25 : vector<1x256xi1> to vector<1x256xi1>
    %83 = vector.broadcast %82 : vector<1x256xi1> to vector<4x256xi1>
    %84 = arith.select %83, %80, %81 : vector<4x256xi1>, vector<4x256xf32>
    %c16_i32_27 = arith.constant 16 : i32
    %85 = tpu.dynamic_rotate %79 by %c16_i32_27 dim 1 : vector<4x256xf32>, i32 -> vector<4x256xf32>
    %cst_28 = arith.constant 0.000000e+00 : f32
    %86 = vector.broadcast %cst_28 : f32 to vector<4x256xf32>
    %87 = vector.shape_cast %18 : vector<1x256xi1> to vector<1x256xi1>
    %88 = vector.broadcast %87 : vector<1x256xi1> to vector<4x256xi1>
    %89 = arith.select %88, %85, %86 : vector<4x256xi1>, vector<4x256xf32>
    %c15_i32_29 = arith.constant 15 : i32
    %90 = tpu.dynamic_rotate %79 by %c15_i32_29 dim 1 : vector<4x256xf32>, i32 -> vector<4x256xf32>
    %cst_30 = arith.constant 0.000000e+00 : f32
    %91 = vector.broadcast %cst_30 : f32 to vector<4x256xf32>
    %92 = vector.shape_cast %26 : vector<1x256xi1> to vector<1x256xi1>
    %93 = vector.broadcast %92 : vector<1x256xi1> to vector<4x256xi1>
    %94 = arith.select %93, %90, %91 : vector<4x256xi1>, vector<4x256xf32>
    %c1_i32_31 = arith.constant 1 : i32
    %95 = tpu.dynamic_rotate %79 by %c1_i32_31 dim 1 : vector<4x256xf32>, i32 -> vector<4x256xf32>
    %cst_32 = arith.constant 0.000000e+00 : f32
    %96 = vector.broadcast %cst_32 : f32 to vector<4x256xf32>
    %97 = vector.shape_cast %22 : vector<1x256xi1> to vector<1x256xi1>
    %98 = vector.broadcast %97 : vector<1x256xi1> to vector<4x256xi1>
    %99 = arith.select %98, %95, %96 : vector<4x256xi1>, vector<4x256xf32>
    %c255_i32_33 = arith.constant 255 : i32
    %100 = tpu.dynamic_rotate %79 by %c255_i32_33 dim 1 : vector<4x256xf32>, i32 -> vector<4x256xf32>
    %cst_34 = arith.constant 0.000000e+00 : f32
    %101 = vector.broadcast %cst_34 : f32 to vector<4x256xf32>
    %102 = vector.shape_cast %24 : vector<1x256xi1> to vector<1x256xi1>
    %103 = vector.broadcast %102 : vector<1x256xi1> to vector<4x256xi1>
    %104 = arith.select %103, %100, %101 : vector<4x256xi1>, vector<4x256xf32>
    %c241_i32_35 = arith.constant 241 : i32
    %105 = tpu.dynamic_rotate %79 by %c241_i32_35 dim 1 : vector<4x256xf32>, i32 -> vector<4x256xf32>
    %cst_36 = arith.constant 0.000000e+00 : f32
    %106 = vector.broadcast %cst_36 : f32 to vector<4x256xf32>
    %107 = vector.shape_cast %27 : vector<1x256xi1> to vector<1x256xi1>
    %108 = vector.broadcast %107 : vector<1x256xi1> to vector<4x256xi1>
    %109 = arith.select %108, %105, %106 : vector<4x256xi1>, vector<4x256xf32>
    %c240_i32_37 = arith.constant 240 : i32
    %110 = tpu.dynamic_rotate %79 by %c240_i32_37 dim 1 : vector<4x256xf32>, i32 -> vector<4x256xf32>
    %cst_38 = arith.constant 0.000000e+00 : f32
    %111 = vector.broadcast %cst_38 : f32 to vector<4x256xf32>
    %112 = vector.shape_cast %20 : vector<1x256xi1> to vector<1x256xi1>
    %113 = vector.broadcast %112 : vector<1x256xi1> to vector<4x256xi1>
    %114 = arith.select %113, %110, %111 : vector<4x256xi1>, vector<4x256xf32>
    %c239_i32_39 = arith.constant 239 : i32
    %115 = tpu.dynamic_rotate %79 by %c239_i32_39 dim 1 : vector<4x256xf32>, i32 -> vector<4x256xf32>
    %cst_40 = arith.constant 0.000000e+00 : f32
    %116 = vector.broadcast %cst_40 : f32 to vector<4x256xf32>
    %117 = vector.shape_cast %28 : vector<1x256xi1> to vector<1x256xi1>
    %118 = vector.broadcast %117 : vector<1x256xi1> to vector<4x256xi1>
    %119 = arith.select %118, %115, %116 : vector<4x256xi1>, vector<4x256xf32>
    %120 = tpu.concatenate %84, %89, %94, %99, %79, %104, %109, %114, %119 in 0 : vector<4x256xf32>, vector<4x256xf32>, vector<4x256xf32>, vector<4x256xf32>, vector<4x256xf32>, vector<4x256xf32>, vector<4x256xf32>, vector<4x256xf32>, vector<4x256xf32> -> vector<36x256xf32>
    %121 = arith.truncf %120 : vector<36x256xf32> to vector<36x256xbf16>
    %cst_41 = arith.constant dense<0.000000e+00> : vector<16x256xf32>
    %122 = tpu.matmul %76, %121, %cst_41 {dimension_numbers = #tpu.dot_dimension_numbers<[1], [0], [0], [1], [0, 0, 1, 1], [], []>} : vector<16x36xbf16>, vector<36x256xbf16>, vector<16x256xf32> -> vector<16x256xf32>
    %123 = arith.addf %75, %122 : vector<16x256xf32>
    %c0_42 = arith.constant 0 : index
    %c0_43 = arith.constant 0 : index
    %124 = vector.load %arg5[%c0_42, %c0_43] : memref<16x1xf32, #tpu.memory_space<vmem>>, vector<16x1xf32>
    %125 = vector.broadcast %124 : vector<16x1xf32> to vector<16x256xf32>
    %126 = arith.mulf %123, %125 : vector<16x256xf32>
    %c0_44 = arith.constant 0 : index
    %c0_45 = arith.constant 0 : index
    %127 = vector.load %arg6[%c0_44, %c0_45] : memref<16x1xf32, #tpu.memory_space<vmem>>, vector<16x1xf32>
    %128 = vector.broadcast %127 : vector<16x1xf32> to vector<16x256xf32>
    %129 = arith.addf %126, %128 : vector<16x256xf32>
    %cst_46 = arith.constant 0.000000e+00 : f32
    %130 = vector.broadcast %cst_46 : f32 to vector<16x256xf32>
    %131 = arith.maximumf %129, %130 : vector<16x256xf32>
    %c0_47 = arith.constant 0 : index
    %c0_48 = arith.constant 0 : index
    %132 = vector.load %arg7[%c0_47, %c0_48] : memref<8x144xbf16, #tpu.memory_space<vmem>>, vector<8x144xbf16>
    %c17_i32_49 = arith.constant 17 : i32
    %133 = tpu.dynamic_rotate %131 by %c17_i32_49 dim 1 : vector<16x256xf32>, i32 -> vector<16x256xf32>
    %cst_50 = arith.constant 0.000000e+00 : f32
    %134 = vector.broadcast %cst_50 : f32 to vector<16x256xf32>
    %135 = vector.shape_cast %25 : vector<1x256xi1> to vector<1x256xi1>
    %136 = vector.broadcast %135 : vector<1x256xi1> to vector<16x256xi1>
    %137 = arith.select %136, %133, %134 : vector<16x256xi1>, vector<16x256xf32>
    %c16_i32_51 = arith.constant 16 : i32
    %138 = tpu.dynamic_rotate %131 by %c16_i32_51 dim 1 : vector<16x256xf32>, i32 -> vector<16x256xf32>
    %cst_52 = arith.constant 0.000000e+00 : f32
    %139 = vector.broadcast %cst_52 : f32 to vector<16x256xf32>
    %140 = vector.shape_cast %18 : vector<1x256xi1> to vector<1x256xi1>
    %141 = vector.broadcast %140 : vector<1x256xi1> to vector<16x256xi1>
    %142 = arith.select %141, %138, %139 : vector<16x256xi1>, vector<16x256xf32>
    %c15_i32_53 = arith.constant 15 : i32
    %143 = tpu.dynamic_rotate %131 by %c15_i32_53 dim 1 : vector<16x256xf32>, i32 -> vector<16x256xf32>
    %cst_54 = arith.constant 0.000000e+00 : f32
    %144 = vector.broadcast %cst_54 : f32 to vector<16x256xf32>
    %145 = vector.shape_cast %26 : vector<1x256xi1> to vector<1x256xi1>
    %146 = vector.broadcast %145 : vector<1x256xi1> to vector<16x256xi1>
    %147 = arith.select %146, %143, %144 : vector<16x256xi1>, vector<16x256xf32>
    %c1_i32_55 = arith.constant 1 : i32
    %148 = tpu.dynamic_rotate %131 by %c1_i32_55 dim 1 : vector<16x256xf32>, i32 -> vector<16x256xf32>
    %cst_56 = arith.constant 0.000000e+00 : f32
    %149 = vector.broadcast %cst_56 : f32 to vector<16x256xf32>
    %150 = vector.shape_cast %22 : vector<1x256xi1> to vector<1x256xi1>
    %151 = vector.broadcast %150 : vector<1x256xi1> to vector<16x256xi1>
    %152 = arith.select %151, %148, %149 : vector<16x256xi1>, vector<16x256xf32>
    %c255_i32_57 = arith.constant 255 : i32
    %153 = tpu.dynamic_rotate %131 by %c255_i32_57 dim 1 : vector<16x256xf32>, i32 -> vector<16x256xf32>
    %cst_58 = arith.constant 0.000000e+00 : f32
    %154 = vector.broadcast %cst_58 : f32 to vector<16x256xf32>
    %155 = vector.shape_cast %24 : vector<1x256xi1> to vector<1x256xi1>
    %156 = vector.broadcast %155 : vector<1x256xi1> to vector<16x256xi1>
    %157 = arith.select %156, %153, %154 : vector<16x256xi1>, vector<16x256xf32>
    %c241_i32_59 = arith.constant 241 : i32
    %158 = tpu.dynamic_rotate %131 by %c241_i32_59 dim 1 : vector<16x256xf32>, i32 -> vector<16x256xf32>
    %cst_60 = arith.constant 0.000000e+00 : f32
    %159 = vector.broadcast %cst_60 : f32 to vector<16x256xf32>
    %160 = vector.shape_cast %27 : vector<1x256xi1> to vector<1x256xi1>
    %161 = vector.broadcast %160 : vector<1x256xi1> to vector<16x256xi1>
    %162 = arith.select %161, %158, %159 : vector<16x256xi1>, vector<16x256xf32>
    %c240_i32_61 = arith.constant 240 : i32
    %163 = tpu.dynamic_rotate %131 by %c240_i32_61 dim 1 : vector<16x256xf32>, i32 -> vector<16x256xf32>
    %cst_62 = arith.constant 0.000000e+00 : f32
    %164 = vector.broadcast %cst_62 : f32 to vector<16x256xf32>
    %165 = vector.shape_cast %20 : vector<1x256xi1> to vector<1x256xi1>
    %166 = vector.broadcast %165 : vector<1x256xi1> to vector<16x256xi1>
    %167 = arith.select %166, %163, %164 : vector<16x256xi1>, vector<16x256xf32>
    %c239_i32_63 = arith.constant 239 : i32
    %168 = tpu.dynamic_rotate %131 by %c239_i32_63 dim 1 : vector<16x256xf32>, i32 -> vector<16x256xf32>
    %cst_64 = arith.constant 0.000000e+00 : f32
    %169 = vector.broadcast %cst_64 : f32 to vector<16x256xf32>
    %170 = vector.shape_cast %28 : vector<1x256xi1> to vector<1x256xi1>
    %171 = vector.broadcast %170 : vector<1x256xi1> to vector<16x256xi1>
    %172 = arith.select %171, %168, %169 : vector<16x256xi1>, vector<16x256xf32>
    %173 = tpu.concatenate %137, %142, %147, %152, %131, %157, %162, %167, %172 in 0 : vector<16x256xf32>, vector<16x256xf32>, vector<16x256xf32>, vector<16x256xf32>, vector<16x256xf32>, vector<16x256xf32>, vector<16x256xf32>, vector<16x256xf32>, vector<16x256xf32> -> vector<144x256xf32>
    %174 = arith.truncf %173 : vector<144x256xf32> to vector<144x256xbf16>
    %cst_65 = arith.constant dense<0.000000e+00> : vector<8x256xf32>
    %175 = tpu.matmul %132, %174, %cst_65 {dimension_numbers = #tpu.dot_dimension_numbers<[1], [0], [0], [1], [0, 0, 1, 1], [], []>} : vector<8x144xbf16>, vector<144x256xbf16>, vector<8x256xf32> -> vector<8x256xf32>
    %c0_66 = arith.constant 0 : index
    %c0_67 = arith.constant 0 : index
    %176 = vector.load %arg8[%c0_66, %c0_67] : memref<8x1xf32, #tpu.memory_space<vmem>>, vector<8x1xf32>
    %177 = vector.broadcast %176 : vector<8x1xf32> to vector<8x256xf32>
    %178 = arith.mulf %175, %177 : vector<8x256xf32>
    %c0_68 = arith.constant 0 : index
    %c0_69 = arith.constant 0 : index
    %179 = vector.load %arg9[%c0_68, %c0_69] : memref<8x1xf32, #tpu.memory_space<vmem>>, vector<8x1xf32>
    %180 = vector.broadcast %179 : vector<8x1xf32> to vector<8x256xf32>
    %181 = arith.addf %178, %180 : vector<8x256xf32>
    %cst_70 = arith.constant 0.000000e+00 : f32
    %182 = vector.broadcast %cst_70 : f32 to vector<8x256xf32>
    %183 = arith.maximumf %181, %182 : vector<8x256xf32>
    %cst_71 = arith.constant dense<0.000000e+00> : vector<8xf32>
    %184 = vector.multi_reduction <add>, %183, %cst_71 [1] : vector<8x256xf32> to vector<8xf32>
    %185 = vector.shape_cast %184 : vector<8xf32> to vector<8x1xf32>
    %cst_72 = arith.constant 2.560000e+02 : f32
    %186 = vector.broadcast %cst_72 : f32 to vector<8x1xf32>
    %187 = arith.divf %185, %186 : vector<8x1xf32>
    %c0_73 = arith.constant 0 : index
    %c0_74 = arith.constant 0 : index
    %188 = vector.load %arg10[%c0_73, %c0_74] : memref<16x8xf32, #tpu.memory_space<vmem>>, vector<16x8xf32>
    %cst_75 = arith.constant dense<0.000000e+00> : vector<16x1xf32>
    %189 = tpu.matmul %188, %187, %cst_75 {dimension_numbers = #tpu.dot_dimension_numbers<[1], [0], [0], [1], [0, 0, 1, 1], [], []>} : vector<16x8xf32>, vector<8x1xf32>, vector<16x1xf32> -> vector<16x1xf32>
    %c0_76 = arith.constant 0 : index
    %c0_77 = arith.constant 0 : index
    %190 = vector.load %arg11[%c0_76, %c0_77] : memref<16x1xf32, #tpu.memory_space<vmem>>, vector<16x1xf32>
    %191 = arith.addf %189, %190 : vector<16x1xf32>
    %cst_78 = arith.constant 0.000000e+00 : f32
    %192 = vector.broadcast %cst_78 : f32 to vector<16x1xf32>
    %193 = arith.maximumf %191, %192 : vector<16x1xf32>
    %c0_79 = arith.constant 0 : index
    %c0_80 = arith.constant 0 : index
    %194 = vector.load %arg12[%c0_79, %c0_80] : memref<8x16xf32, #tpu.memory_space<vmem>>, vector<8x16xf32>
    %cst_81 = arith.constant dense<0.000000e+00> : vector<8x1xf32>
    %195 = tpu.matmul %194, %193, %cst_81 {dimension_numbers = #tpu.dot_dimension_numbers<[1], [0], [0], [1], [0, 0, 1, 1], [], []>} : vector<8x16xf32>, vector<16x1xf32>, vector<8x1xf32> -> vector<8x1xf32>
    %c0_82 = arith.constant 0 : index
    %c0_83 = arith.constant 0 : index
    %196 = vector.load %arg13[%c0_82, %c0_83] : memref<8x1xf32, #tpu.memory_space<vmem>>, vector<8x1xf32>
    %197 = arith.addf %195, %196 : vector<8x1xf32>
    %cst_84 = arith.constant 0.000000e+00 : f32
    %198 = vector.broadcast %cst_84 : f32 to vector<8x1xf32>
    %199 = arith.subf %198, %197 : vector<8x1xf32>
    %200 = math.exp %199 : vector<8x1xf32>
    %cst_85 = arith.constant 1.000000e+00 : f32
    %201 = vector.broadcast %cst_85 : f32 to vector<8x1xf32>
    %202 = arith.addf %201, %200 : vector<8x1xf32>
    %203 = tpu.reciprocal %202 {approx = true} : vector<8x1xf32> -> vector<8x1xf32>
    %c0_86 = arith.constant 0 : index
    %c0_87 = arith.constant 0 : index
    %204 = vector.load %arg14[%c0_86, %c0_87] : memref<1x8xf32, #tpu.memory_space<vmem>>, vector<1x8xf32>
    %cst_88 = arith.constant dense<0.000000e+00> : vector<1x256xf32>
    %205 = tpu.matmul %204, %183, %cst_88 {dimension_numbers = #tpu.dot_dimension_numbers<[1], [0], [0], [1], [0, 0, 1, 1], [], []>} : vector<1x8xf32>, vector<8x256xf32>, vector<1x256xf32> -> vector<1x256xf32>
    %c0_89 = arith.constant 0 : index
    %c0_90 = arith.constant 0 : index
    %206 = vector.load %arg15[%c0_89, %c0_90] : memref<1x1xf32, #tpu.memory_space<vmem>>, vector<1x1xf32>
    %207 = vector.broadcast %206 : vector<1x1xf32> to vector<1x256xf32>
    %208 = arith.addf %205, %207 : vector<1x256xf32>
    %cst_91 = arith.constant 0.000000e+00 : f32
    %209 = vector.broadcast %cst_91 : f32 to vector<1x256xf32>
    %210 = arith.subf %209, %208 : vector<1x256xf32>
    %211 = math.exp %210 : vector<1x256xf32>
    %cst_92 = arith.constant 1.000000e+00 : f32
    %212 = vector.broadcast %cst_92 : f32 to vector<1x256xf32>
    %213 = arith.addf %212, %211 : vector<1x256xf32>
    %214 = tpu.reciprocal %213 {approx = true} : vector<1x256xf32> -> vector<1x256xf32>
    %215 = vector.broadcast %203 : vector<8x1xf32> to vector<8x256xf32>
    %216 = vector.broadcast %214 : vector<1x256xf32> to vector<8x256xf32>
    %217 = arith.addf %215, %216 : vector<8x256xf32>
    %218 = arith.mulf %217, %183 : vector<8x256xf32>
    %219 = arith.truncf %218 : vector<8x256xf32> to vector<8x256xbf16>
    %c0_93 = arith.constant 0 : index
    %c0_94 = arith.constant 0 : index
    %c0_95 = arith.constant 0 : index
    %220 = vector.load %arg16[%c0_93, %c0_94, %c0_95] : memref<1x8x256xbf16, #tpu.memory_space<vmem>>, vector<1x8x256xbf16>
    %221 = vector.shape_cast %220 : vector<1x8x256xbf16> to vector<8x256xbf16>
    %222 = vector.shape_cast %219 : vector<8x256xbf16> to vector<1x8x256xbf16>
    tpu.vector_store %arg16[%c0_93, %c0_94, %c0_95], %222 {strides = array<i32>} : memref<1x8x256xbf16, #tpu.memory_space<vmem>>, vector<1x8x256xbf16>,
    return
  }
  func.func @transform_0(%arg0: i32) -> (i32, i32, i32) {
    %c0_i32 = arith.constant 0 : i32
    %c0_i32_0 = arith.constant 0 : i32
    %c0_i32_1 = arith.constant 0 : i32
    return %arg0, %c0_i32, %c0_i32_0 : i32, i32, i32
  }
  func.func @transform_1(%arg0: i32) -> (i32, i32, i32) {
    %c0_i32 = arith.constant 0 : i32
    %c0_i32_0 = arith.constant 0 : i32
    %c0_i32_1 = arith.constant 0 : i32
    return %arg0, %c0_i32, %c0_i32_0 : i32, i32, i32
  }
  func.func @transform_2(%arg0: i32) -> (i32, i32) {
    %c0_i32 = arith.constant 0 : i32
    %c0_i32_0 = arith.constant 0 : i32
    %c0_i32_1 = arith.constant 0 : i32
    return %c0_i32, %c0_i32_0 : i32, i32
  }
  func.func @transform_3(%arg0: i32) -> (i32, i32) {
    %c0_i32 = arith.constant 0 : i32
    %c0_i32_0 = arith.constant 0 : i32
    %c0_i32_1 = arith.constant 0 : i32
    return %c0_i32, %c0_i32_0 : i32, i32
  }
  func.func @transform_4(%arg0: i32) -> (i32, i32) {
    %c0_i32 = arith.constant 0 : i32
    %c0_i32_0 = arith.constant 0 : i32
    %c0_i32_1 = arith.constant 0 : i32
    return %c0_i32, %c0_i32_0 : i32, i32
  }
  func.func @transform_5(%arg0: i32) -> (i32, i32) {
    %c0_i32 = arith.constant 0 : i32
    %c0_i32_0 = arith.constant 0 : i32
    %c0_i32_1 = arith.constant 0 : i32
    return %c0_i32, %c0_i32_0 : i32, i32
  }
  func.func @transform_6(%arg0: i32) -> (i32, i32) {
    %c0_i32 = arith.constant 0 : i32
    %c0_i32_0 = arith.constant 0 : i32
    %c0_i32_1 = arith.constant 0 : i32
    return %c0_i32, %c0_i32_0 : i32, i32
  }
  func.func @transform_7(%arg0: i32) -> (i32, i32) {
    %c0_i32 = arith.constant 0 : i32
    %c0_i32_0 = arith.constant 0 : i32
    %c0_i32_1 = arith.constant 0 : i32
    return %c0_i32, %c0_i32_0 : i32, i32
  }
  func.func @transform_8(%arg0: i32) -> (i32, i32) {
    %c0_i32 = arith.constant 0 : i32
    %c0_i32_0 = arith.constant 0 : i32
    %c0_i32_1 = arith.constant 0 : i32
    return %c0_i32, %c0_i32_0 : i32, i32
  }
  func.func @transform_9(%arg0: i32) -> (i32, i32) {
    %c0_i32 = arith.constant 0 : i32
    %c0_i32_0 = arith.constant 0 : i32
    %c0_i32_1 = arith.constant 0 : i32
    return %c0_i32, %c0_i32_0 : i32, i32
  }
  func.func @transform_10(%arg0: i32) -> (i32, i32) {
    %c0_i32 = arith.constant 0 : i32
    %c0_i32_0 = arith.constant 0 : i32
    %c0_i32_1 = arith.constant 0 : i32
    return %c0_i32, %c0_i32_0 : i32, i32
  }
  func.func @transform_11(%arg0: i32) -> (i32, i32) {
    %c0_i32 = arith.constant 0 : i32
    %c0_i32_0 = arith.constant 0 : i32
    %c0_i32_1 = arith.constant 0 : i32
    return %c0_i32, %c0_i32_0 : i32, i32
  }
  func.func @transform_12(%arg0: i32) -> (i32, i32) {
    %c0_i32 = arith.constant 0 : i32
    %c0_i32_0 = arith.constant 0 : i32
    %c0_i32_1 = arith.constant 0 : i32
    return %c0_i32, %c0_i32_0 : i32, i32
  }
  func.func @transform_13(%arg0: i32) -> (i32, i32) {
    %c0_i32 = arith.constant 0 : i32
    %c0_i32_0 = arith.constant 0 : i32
    %c0_i32_1 = arith.constant 0 : i32
    return %c0_i32, %c0_i32_0 : i32, i32
  }
  func.func @transform_14(%arg0: i32) -> (i32, i32) {
    %c0_i32 = arith.constant 0 : i32
    %c0_i32_0 = arith.constant 0 : i32
    %c0_i32_1 = arith.constant 0 : i32
    return %c0_i32, %c0_i32_0 : i32, i32
  }
  func.func @transform_15(%arg0: i32) -> (i32, i32, i32) {
    %c0_i32 = arith.constant 0 : i32
    %c0_i32_0 = arith.constant 0 : i32
    %c0_i32_1 = arith.constant 0 : i32
    return %arg0, %c0_i32, %c0_i32_0 : i32, i32, i32
  }
}

</mosaic_0001>

<bundles_post_ra>
// kernel: decoder_forward.1
= control target key start
LH: loop header
LB: loop body
LE: loop exit
PB: predicated region body
PF: predicated region fallthrough
CT: control target
= control target key end

     0   :  { %s1848_s20 = smov 0   ;;  %s2348_s0 = inlined_call_operand.vmem [shape: bf16[2,4,256], index: 0, kind: input, shape index: {}]   ;;  %s2349_s1 = inlined_call_operand.vmem [shape: bf16[2,4,256], index: 1, kind: input, shape index: {}]   ;;  %s2350_s2 = inlined_call_operand.vmem [shape: bf16[16,36], index: 2, kind: input, shape index: {}]   ;;  %s2351_s3 = inlined_call_operand.vmem [shape: bf16[16,36], index: 3, kind: input, shape index: {}]   ;;  %s2352_s4 = inlined_call_operand.vmem [shape: f32[16,1], index: 4, kind: input, shape index: {}]   ;;  %s2353_s5 = inlined_call_operand.vmem [shape: f32[16,1], index: 5, kind: input, shape index: {}]   ;;  %s2354_s6 = inlined_call_operand.vmem [shape: bf16[8,144], index: 6, kind: input, shape index: {}]   ;;  %s2355_s7 = inlined_call_operand.vmem [shape: f32[8,1], index: 7, kind: input, shape index: {}]   ;;  %s2356_s8 = inlined_call_operand.vmem [shape: f32[8,1], index: 8, kind: input, shape index: {}]   ;;  %s2357_s9 = inlined_call_operand.vmem [shape: f32[16,8], index: 9, kind: input, shape index: {}]   ;;  %s2358_s10 = inlined_call_operand.vmem [shape: f32[16,1], index: 10, kind: input, shape index: {}]   ;;  %s2359_s11 = inlined_call_operand.vmem [shape: f32[8,16], index: 11, kind: input, shape index: {}]   ;;  %s2360_s12 = inlined_call_operand.vmem [shape: f32[8,1], index: 12, kind: input, shape index: {}]   ;;  %s2361_s13 = inlined_call_operand.vmem [shape: f32[1,8], index: 13, kind: input, shape index: {}]   ;;  %s2362_s14 = inlined_call_operand.<no memory space> [shape: f32[1,1], index: 14, kind: input, shape index: {}]   ;;  %s2363_s15 = inlined_call_operand.vmem [shape: bf16[2,8,256], index: 15, kind: output, shape index: {}]  }
   0x1   :  { %v20_v0 = vstv %s2362_s14 }
   0x2   :  { %21 = vst [vmem:[#allocation2] sm:$0x1] %v20_v0 }
   0x3 LB: > { %s1473_s21 = sadd.s32 4294967295, %s1753_s20   ;;  %p1477_p0 = scmp.ge.s32.totalorder %s1753_s20, 1  ;;  %s1753_s20 = sphi %s1848_s20, %s27_s20  }
   0x4   : > { %p449_p1 = scmp.lt.s32.totalorder %s1753_s20, 3 }
   0x6   : > { %p450_p2 = pnand %p1477_p0, %p449_p1 }
   0x7   : > { %p502_p3 = scmp.lt.s32.totalorder (!%p450_p2), %s1473_s21, 1  ;;  %s1755_s25 = smov (!%p450_p2), 17  }
   0x8   : > { %453 = sbr.rel (%p450_p2) target bundleno = 1245 (0x4dd), region = 80  ;;  %s1756_s26 = smov (!%p450_p2), 127  }
   0x9   : > { %s1757_s27 = smov (!%p450_p2), 113   ;;  %s1758_s28 = smov (!%p450_p2), 16  }
   0xa   : > { %s1759_s29 = smov (!%p450_p2), 112   ;;  %s1760_s18 = smov (!%p450_p2), 111  }
   0xb   : > { %s1761_s19 = smov (!%p450_p2), 15  }
   0xd   : > { %s2425_s21 = smov (!%p502_p3, %s1473_s21), 1  ;;  %v518_v56 = vlaneseq  ;;  %vm2365_vm7 = vcmask 1041408   ;;  %vm739_vm11 = vcmask 1043456  }
   0xe   : > { %s1547_s14 = sshll.u32 %s2425_s21, 2 }
   0xf   : > { %s506_s24 = scalar_lea.vmem %s2348_s0, %s1547_s14  ;;  %s511_s17 = scalar_lea.vmem %s2349_s1, %s1547_s14  ;;  %v1891_v58 = vand.u32 127, %v518_v56 }
  0x10   : > { %v563_v1 = vld [vmem:[%s506_s24] sm:$0xf]  ;;  %s1762_s14 = smov 1  }
  0x11   : > { %v564_v2 = vunpack.c.l.bf16 %v563_v1  ;;  %v756_v25 = vld [vmem:[%s511_s17] sm:$0xf]  ;;  %v1894_v63 = vadd.s32 128, %v1891_v58  ;;  %vm2370_vm0 = vcmp.lt.s32.totalorder %v1891_v58, 16  ;;  %vm2369_vm1 = vcmp.lt.s32.totalorder %v1891_v58, 127 }
  0x12   : > { %v757_v26 = vunpack.c.l.bf16 %v756_v25  ;;  %vm683_vm2 = vcmp.lt.s32.totalorder %v1891_v58, 112  ;;  %vm2364_vm3 = vcmp.lt.s32.totalorder %v1891_v58, 111  ;;  %vm2366_vm10 = vcmp.lt.s32.totalorder %v1891_v58, 113 }
  0x13   : > { %566 = vst [vmem:[#allocation1] ss:$2 sm:$0xff] %v564_v2  ;;  %vm2367_vm4 = vcmp.lt.s32.totalorder %v1894_v63, 240  ;;  %vm2371_vm14 = vcmp.ge.s32.totalorder %v1891_v58, 16 }
  0x1a   : > { %v567_v3 = vld.sshfl [vmem:[#allocation1] sm:$0xff pattern:$0x75316420]  ;;  %v568_v4 = vld.sshfl [vmem:[#allocation1 + $0x8] sm:$0xff pattern:$0x75316420] }
  0x1b   : > { %v1570_v5 = vpack.i.bf16 %v568_v4, %v567_v3  ;;  %584 = vst [vmem:[#allocation1] ss:$2 sm:$0xff] %v564_v2 }
  0x1d   : > { %1571 = vrot.lane.b32.xlu1 %v1570_v5, %s1755_s25 }
  0x22   : > { %v585_v6 = vld.sshfl [vmem:[#allocation1] sm:$0xff pattern:$0x75316420]  ;;  %v586_v7 = vld.sshfl [vmem:[#allocation1 + $0x8] sm:$0xff pattern:$0x75316420] }
  0x23   : > { %602 = vst [vmem:[#allocation1] ss:$2 sm:$0xff] %v564_v2  ;;  %v1575_v18 = vpack.i.bf16 %v586_v7, %v585_v6  ;;  %v532_v6 = vand.u32 15, %v1894_v63  ;;  %v525_v7 = vand.u32 15, %v1891_v58 }
  0x25   : > { %1576 = vrot.lane.b32.xlu2 %v1575_v18, %s1758_s28  ;;  %vm1918_vm5 = vcmp.le.s32.totalorder %v532_v6, 14  ;;  %vm1922_vm6 = vcmp.le.s32.totalorder %v525_v7, 14  ;;  %vm1936_vm9 = vcmp.ge.s32.totalorder %v525_v7, 1  ;;  %vm1943_vm12 = vcmp.ge.s32.totalorder %v532_v6, 1 }
  0x26   : > { %vm1932_vm8 = vmand %vm2367_vm4, %vm1918_vm5 }
  0x27   : > { %vm1957_vm13 = vmand %vm2367_vm4, %vm1943_vm12 }
  0x28   : > { %vm1987_vm15 = vmand %vm2371_vm14, %vm1936_vm9 }
  0x2a   : > { %v603_v8 = vld.sshfl [vmem:[#allocation1] sm:$0xff pattern:$0x75316420]  ;;  %v604_v9 = vld.sshfl [vmem:[#allocation1 + $0x8] sm:$0xff pattern:$0x75316420] }
  0x2b   : > { %620 = vst [vmem:[#allocation1] ss:$2 sm:$0xff] %v564_v2  ;;  %v1580_v29 = vpack.i.bf16 %v604_v9, %v603_v8 }
  0x2d   : > { %1581 = vrot.lane.b32.xlu2 %v1580_v29, %s1761_s19 }
  0x32   : > { %v621_v10 = vld.sshfl [vmem:[#allocation1] sm:$0xff pattern:$0x75316420]  ;;  %v622_v11 = vld.sshfl [vmem:[#allocation1 + $0x8] sm:$0xff pattern:$0x75316420] }
  0x33   : > { %638 = vst [vmem:[#allocation1] ss:$2 sm:$0xff] %v564_v2  ;;  %v1585_v37 = vpack.i.bf16 %v622_v11, %v621_v10 }
  0x35   : > { %1586 = vrot.lane.b32.xlu2 %v1585_v37, %s1762_s14 }
  0x3a   : > { %v639_v12 = vld.sshfl [vmem:[#allocation1] sm:$0xff pattern:$0x75316420]  ;;  %v640_v13 = vld.sshfl [vmem:[#allocation1 + $0x8] sm:$0xff pattern:$0x75316420] }
  0x3b   : > { %v1590_v14 = vpack.i.bf16 %v640_v13, %v639_v12  ;;  %656 = vst [vmem:[#allocation1] ss:$2 sm:$0xff] %v564_v2 }
  0x3d   : > { %1591 = vrot.lane.b32.xlu0 %v1590_v14, %s1756_s26 }
  0x42   : > { %v657_v15 = vld.sshfl [vmem:[#allocation1] sm:$0xff pattern:$0x75316420]  ;;  %v658_v16 = vld.sshfl [vmem:[#allocation1 + $0x8] sm:$0xff pattern:$0x75316420] }
  0x43   : > { %v1595_v17 = vpack.i.bf16 %v658_v16, %v657_v15  ;;  %674 = vst [vmem:[#allocation1] ss:$2 sm:$0xff] %v564_v2  ;;  %v1028_v15 = vld [vmem:[%s2354_s6] sm:$0xff] }
  0x45   : > { %1596 = vrot.lane.b32.xlu1 %v1595_v17, %s1757_s27 }
  0x4a   : > { %v675_v19 = vld.sshfl [vmem:[#allocation1] sm:$0xff pattern:$0x75316420]  ;;  %v676_v20 = vld.sshfl [vmem:[#allocation1 + $0x8] sm:$0xff pattern:$0x75316420] }
  0x4b   : > { %692 = vst [vmem:[#allocation1] ss:$2 sm:$0xff] %v564_v2  ;;  %v1600_v21 = vpack.i.bf16 %v676_v20, %v675_v19 }
  0x4d   : > { %1601 = vrot.lane.b32.xlu1 %v1600_v21, %s1759_s29 }
  0x52   : > { %v693_v22 = vld.sshfl [vmem:[#allocation1] sm:$0xff pattern:$0x75316420]  ;;  %v694_v23 = vld.sshfl [vmem:[#allocation1 + $0x8] sm:$0xff pattern:$0x75316420] }
  0x53   : > { %v1605_v24 = vpack.i.bf16 %v694_v23, %v693_v22  ;;  %722 = vst [vmem:[#allocation1] ss:$2 sm:$0xff] %v564_v2 }
  0x55   : > { %1606 = vrot.lane.b32.xlu0 %v1605_v24, %s1760_s18 }
  0x5a   : > { %v1875_v27 = vld.sshfl [vmem:[#allocation1] sm:$0xff pattern:$0x75316420]  ;;  %v1877_v28 = vld.sshfl [vmem:[#allocation1 + $0x8] sm:$0xff pattern:$0x75316420] }
  0x5b   : > { %759 = vst [vmem:[#allocation1] ss:$2 sm:$0xff] %v757_v26 }
  0x62   : > { %v760_v30 = vld.sshfl [vmem:[#allocation1] sm:$0xff pattern:$0x75316420]  ;;  %v761_v31 = vld.sshfl [vmem:[#allocation1 + $0x8] sm:$0xff pattern:$0x75316420] }
  0x63   : > { %772 = vst [vmem:[#allocation1] ss:$2 sm:$0xff] %v757_v26  ;;  %v1635_v46 = vpack.i.bf16 %v761_v31, %v760_v30 }
  0x6a   : > { %v773_v32 = vld.sshfl [vmem:[#allocation1] sm:$0xff pattern:$0x75316420]  ;;  %v774_v33 = vld.sshfl [vmem:[#allocation1 + $0x8] sm:$0xff pattern:$0x75316420] }
  0x6b   : > { %v1610_v34 = vpack.i.bf16 %v774_v33, %v773_v32  ;;  %785 = vst [vmem:[#allocation1] ss:$2 sm:$0xff] %v757_v26 }
  0x6d   : > { %1611 = vrot.lane.b32.xlu0 %v1610_v34, %s1758_s28 }
  0x72   : > { %v786_v35 = vld.sshfl [vmem:[#allocation1] sm:$0xff pattern:$0x75316420]  ;;  %v787_v36 = vld.sshfl [vmem:[#allocation1 + $0x8] sm:$0xff pattern:$0x75316420] }
  0x73   : > { %798 = vst [vmem:[#allocation1] ss:$2 sm:$0xff] %v757_v26  ;;  %v1645_v54 = vpack.i.bf16 %v787_v36, %v786_v35 }
  0x7a   : > { %v799_v38 = vld.sshfl [vmem:[#allocation1] sm:$0xff pattern:$0x75316420]  ;;  %v800_v39 = vld.sshfl [vmem:[#allocation1 + $0x8] sm:$0xff pattern:$0x75316420] }
  0x7b   : > { %811 = vst [vmem:[#allocation1] ss:$2 sm:$0xff] %v757_v26  ;;  %v1630_v50 = vpack.i.bf16 %v800_v39, %v799_v38 }
  0x7f   : > { %v1577_v59 = vpop.permute.xlu2 %1576 }
  0x80   : > { %v1579_v60 = vunpack.i.h.bf16 %v1577_v59  ;;  %v1578_v61 = vunpack.i.l.bf16 %v1577_v59 }
  0x82   : > { %v812_v40 = vld.sshfl [vmem:[#allocation1] sm:$0xff pattern:$0x75316420]  ;;  %v813_v41 = vld.sshfl [vmem:[#allocation1 + $0x8] sm:$0xff pattern:$0x75316420]  ;;  %v1899_v5 = vsel %vm2370_vm0, %v1578_v61, %v1579_v60  ;;  %v595_v10 = vsel %vm2370_vm0, %v1579_v60, %v1578_v61 }
  0x83   : > { %v1615_v42 = vpack.i.bf16 %v813_v41, %v812_v40  ;;  %824 = vst [vmem:[#allocation1] ss:$2 sm:$0xff] %v757_v26  ;;  %v713_v11 = vrot.slane %v1899_v5, 4  ;;  %v600_v56 = vsel %vm2371_vm14, %v595_v10, 0.0 }
  0x85   : > { %1616 = vrot.lane.b32.xlu0 %v1615_v42, %s1756_s26 }
  0x87   : > { %v1582_v18 = vpop.permute.xlu2 %1581 }
  0x88   : > { %v1584_v20 = vunpack.i.h.bf16 %v1582_v18  ;;  %v1583_v21 = vunpack.i.l.bf16 %v1582_v18 }
  0x8a   : > { %v825_v43 = vld.sshfl [vmem:[#allocation1] sm:$0xff pattern:$0x75316420]  ;;  %v826_v44 = vld.sshfl [vmem:[#allocation1 + $0x8] sm:$0xff pattern:$0x75316420] }
  0x8b   : > { %837 = vst [vmem:[#allocation1] ss:$2 sm:$0xff] %v757_v26  ;;  %v1620_v45 = vpack.i.bf16 %v826_v44, %v825_v43 }
  0x8d   : > { %1621 = vrot.lane.b32.xlu2 %v1620_v45, %s1757_s27 }
  0x8f   : > { %v1889_v55 = vpop.permute.xlu1 %1571 }
  0x90   : > { %v1574_v8 = vunpack.i.h.bf16 %v1889_v55  ;;  %v1573_v9 = vunpack.i.l.bf16 %v1889_v55 }
  0x92   : > { %v838_v47 = vld.sshfl [vmem:[#allocation1] sm:$0xff pattern:$0x75316420]  ;;  %v839_v48 = vld.sshfl [vmem:[#allocation1 + $0x8] sm:$0xff pattern:$0x75316420] }
  0x93   : > { %v1625_v49 = vpack.i.bf16 %v839_v48, %v838_v47  ;;  %850 = vst [vmem:[#allocation1] ss:$2 sm:$0xff] %v757_v26 }
  0x95   : > { %1626 = vrot.lane.b32.xlu1 %v1625_v49, %s1759_s29  ;;  %1636 = vrot.lane.b32.xlu2 %v1635_v46, %s1755_s25 }
  0x9a   : > { %v851_v51 = vld.sshfl [vmem:[#allocation1] sm:$0xff pattern:$0x75316420]  ;;  %v852_v52 = vld.sshfl [vmem:[#allocation1 + $0x8] sm:$0xff pattern:$0x75316420] }
  0x9b   : > { %v1640_v53 = vpack.i.bf16 %v852_v52, %v851_v51  ;;  %875 = vst [vmem:[#allocation1] ss:$2 sm:$0xff] %v757_v26 }
  0x9d   : > { %1641 = vrot.lane.b32.xlu0 %v1640_v53, %s1760_s18  ;;  %1631 = vrot.lane.b32.xlu1 %v1630_v50, %s1762_s14 }
  0xa5   : > { %1646 = vrot.lane.b32.xlu0 %v1645_v54, %s1761_s19 }
  0xaf   : > { %v1592_v62 = vpop.permute.xlu0 %1591 }
  0xb0   : > { %v1594_v1 = vunpack.i.h.bf16 %v1592_v62  ;;  %v1593_v2 = vunpack.i.l.bf16 %v1592_v62 }
  0xb2   : > { %v648_v12 = vsel %vm2369_vm1, %v1593_v2, %v1594_v1  ;;  %v649_v14 = vsel %vm2369_vm1, %v1594_v1, %v1593_v2  ;;  %v712_v2 = vrot.slane %v600_v56, 4 }
  0xb3   : > { %v654_v31 = vsel %vm1922_vm6, %v648_v12, 0.0  ;;  %v655_v38 = vsel %vm1918_vm5, %v649_v14, 0.0 }
  0xb4   : > { %v729_v32 = vrot.slane %v654_v31, 4  ;;  %v730_v50 = vrot.slane %v655_v38, 4  ;;  %v1763_v31 = vmov 0  }
  0xb5   : > { %1650 = vset.pattern.permute.xlu1 %v1763_v31  ;;  %1652 = vset.pattern.permute.xlu0 %v1763_v31 }
  0xb6   : > { %v744_v42 = vsel %vm739_vm11, %v1875_v27, %v729_v32  ;;  %v745_v53 = vsel %vm739_vm11, %v1877_v28, %v730_v50  ;;  %v993_v32 = vld [vmem:[%s2352_s4 + $0x8] sm:$0xff]  ;;  %1651 = vset.pattern.permute.xlu2 %v1763_v31 }
  0xb7   : > { %v1597_v57 = vpop.permute.xlu1 %1596  ;;  %1001 = vperm.xlu2 %1651, %v993_v32  }
  0xb8   : > { %v1599_v16 = vunpack.i.h.bf16 %v1597_v57  ;;  %v1598_v17 = vunpack.i.l.bf16 %v1597_v57  ;;  %v1587_v57 = vpop.permute.xlu2 %1586 }
  0xb9   : > { %v1589_v61 = vunpack.i.h.bf16 %v1587_v57  ;;  %v1588_v62 = vunpack.i.l.bf16 %v1587_v57 }
  0xba   : > { %v666_v36 = vsel %vm2366_vm10, %v1598_v17, %v1599_v16  ;;  %v667_v46 = vsel %vm2366_vm10, %v1599_v16, %v1598_v17  ;;  %vm629_vm10 = vcmp.lt.s32.totalorder %v1891_v58, 1 }
  0xbb   : > { %v672_v41 = vsel %vm1936_vm9, %v666_v36, 0.0  ;;  %v673_v48 = vsel %vm1957_vm13, %v667_v46, 0.0  ;;  %v630_v7 = vsel %vm629_vm10, %v1588_v62, %v1589_v61  ;;  %v631_v10 = vsel %vm629_vm10, %v1589_v61, %v1588_v62 }
  0xbf   : > { %v1602_v0 = vpop.permute.xlu1 %1601 }
  0xc0   : > { %v1604_v3 = vunpack.i.h.bf16 %v1602_v0  ;;  %v1603_v4 = vunpack.i.l.bf16 %v1602_v0 }
  0xc2   : > { %v684_v13 = vsel %vm683_vm2, %v1603_v4, %v1604_v3  ;;  %v685_v23 = vsel %vm683_vm2, %v1604_v3, %v1603_v4 }
  0xc3   : > { %v735_v24 = vrot.slane %v684_v13, 4  ;;  %v691_v49 = vsel %vm2367_vm4, %v685_v23, 0.0  ;;  %vm2009_vm4 = vmand %vm2371_vm14, %vm1922_vm6  ;;  %v637_v13 = vsel %vm1943_vm12, %v630_v7, 0.0 }
  0xc4   : > { %v736_v27 = vrot.slane %v691_v49, 4  ;;  %v719_v17 = vrot.slane %v637_v13, 4 }
  0xc5   : > { %v746_v45 = vsel %vm739_vm11, %v672_v41, %v735_v24  ;;  %v1550_v24 = vld [vmem:[%s2350_s2] sm:$0xff] }
  0xc6   : > { %v750_v47 = vpack.c.bf16 %v746_v45, %v744_v42  ;;  %v747_v28 = vsel %vm739_vm11, %v673_v48, %v736_v27 }
  0xc7   : > { %v1607_v22 = vpop.permute.xlu0 %1606  ;;  %v751_v0 = vpack.c.bf16 %v747_v28, %v745_v53 }
  0xc8   : > { %v1609_v25 = vunpack.i.h.bf16 %v1607_v22  ;;  %v1608_v26 = vunpack.i.l.bf16 %v1607_v22 }
  0xca   : > { %v702_v34 = vsel %vm2364_vm3, %v1608_v26, %v1609_v25  ;;  %v703_v35 = vsel %vm2364_vm3, %v1609_v25, %v1608_v26  ;;  %vm2372_vm3 = vcmp.lt.s32.totalorder %v1891_v58, 17  ;;  %v1008_v26 = vld [vmem:[%s2353_s5] sm:$0xff] }
  0xcb   : > { %v708_v39 = vsel %vm1922_vm6, %v702_v34, 0.0  ;;  %v709_v40 = vsel %vm1932_vm8, %v703_v35, 0.0  ;;  %v577_v59 = vsel %vm2372_vm3, %v1574_v8, %v1573_v9  ;;  %v576_v4 = vsel %vm2372_vm3, %v1573_v9, %v1574_v8  ;;  %1012 = vperm.xlu0 %1652, %v1008_v26  }
  0xcc   : > { %v752_v43 = vpack.c.bf16 %v708_v39, %v708_v39  ;;  %v753_v44 = vpack.c.bf16 %v709_v40, %v709_v40  ;;  %v582_v3 = vsel %vm1987_vm15, %v577_v59, 0.0  ;;  %v583_v12 = vsel %vm1943_vm12, %v576_v4, 0.0 }
  0xcd   : > { %v636_v8 = vsel %vm1936_vm9, %v631_v10, 0.0  ;;  %v740_v16 = vsel %vm739_vm11, %v582_v3, %v712_v2  ;;  %v741_v18 = vsel %vm739_vm11, %v583_v12, %v713_v11  ;;  %v992_v11 = vld [vmem:[%s2352_s4] sm:$0xff] }
  0xce   : > { %v959_v51 = vsel %vm2365_vm7, %v752_v43, 0  ;;  %v962_v52 = vsel %vm2365_vm7, %v753_v44, 0  ;;  %vm2368_vm7 = vcmp.lt.s32.totalorder %v1891_v58, 15  ;;  %v718_v14 = vrot.slane %v636_v8, 4  ;;  %996 = vperm.xlu1 %1650, %v992_v11   ;;  %v1009_v43 = vld [vmem:[%s2353_s5 + $0x8] sm:$0xff] }
  0xcf   : > { %969 = vmatpush.bf16.msra.mxu2 %v959_v51  ;;  %983 = vmatpush.bf16.msra.mxu3 %v962_v52  ;;  %v613_v60 = vsel %vm2368_vm7, %v1584_v20, %v1583_v21  ;;  %v612_v6 = vsel %vm2368_vm7, %v1583_v21, %v1584_v20  ;;  %vm911_vm7 = vcmask 293888  }
  0xd0   : > { %v618_v55 = vsel %vm2009_vm4, %v613_v60, 0.0  ;;  %v619_v9 = vsel %vm1918_vm5, %v612_v6, 0.0 }
  0xd1   : > { %v742_v20 = vsel %vm739_vm11, %v618_v55, %v718_v14  ;;  %v743_v21 = vsel %vm739_vm11, %v619_v9, %v719_v17  ;;  %v877_v17 = vld.sshfl [vmem:[#allocation1 + $0x8] sm:$0xff pattern:$0x75316420] }
  0xd2   : > { %v748_v22 = vpack.c.bf16 %v742_v20, %v740_v16  ;;  %v749_v23 = vpack.c.bf16 %v743_v21, %v741_v18  ;;  %v876_v16 = vld.sshfl [vmem:[#allocation1] sm:$0xff pattern:$0x75316420] }
  0xd3   : > { %970 = vmatpush.bf16.msra.mxu2 %v750_v47  ;;  %984 = vmatpush.bf16.msra.mxu3 %v751_v0 }
  0xd6   : > { %1017 = vperm.xlu1 %1650, %v1009_v43  }
  0xd7   : > { %971 = vmatpush.bf16.msra.mxu2 %v748_v22  ;;  %985 = vmatpush.bf16.msra.mxu3 %v749_v23 }
  0xda   : > { %1495 = vmatmul.msk.bf16.vlgmr.msra.gmra.mxu3 %vm911_vm7, %v1550_v24  ;;  %1494 = vmatmul.msk.bf16.vlgmr.msra.gmra.mxu2 %vm911_vm7, %v1550_v24 }
  0xdf   : > { %v1612_v5 = vpop.permute.xlu0 %1611 }
  0xe0   : > { %v1614_v35 = vunpack.i.h.bf16 %v1612_v5  ;;  %v1613_v36 = vunpack.i.l.bf16 %v1612_v5 }
  0xe2   : > { %v782_v45 = vsel %vm2370_vm0, %v1614_v35, %v1613_v36  ;;  %v2070_v51 = vsel %vm2370_vm0, %v1613_v36, %v1614_v35  ;;  %vm2390_vm0 = vcmp.lt.s32.totalorder %v1891_v58, 113 }
  0xe3   : > { %v783_v52 = vsel %vm2371_vm14, %v782_v45, 0.0  ;;  %vm2391_vm14 = vmmov %vm2390_vm0 }
  0xe7   : > { %v1622_v25 = vpop.permute.xlu2 %1621 }
  0xe8   : > { %v1624_v44 = vunpack.i.h.bf16 %v1622_v25  ;;  %v1623_v46 = vunpack.i.l.bf16 %v1622_v25 }
  0xea   : > { %v833_v62 = vsel %vm2390_vm0, %v1623_v46, %v1624_v44  ;;  %v834_v0 = vsel %vm2391_vm14, %v1624_v44, %v1623_v46  ;;  %vm2394_vm14 = vcmask 1041408  }
  0xeb   : > { %v835_v21 = vsel %vm1936_vm9, %v833_v62, 0.0  ;;  %v836_v22 = vsel %vm1957_vm13, %v834_v0, 0.0 }
  0xef   : > { %v1637_v50 = vpop.permute.xlu2 %1636 }
  0xf0   : > { %v1639_v28 = vunpack.i.h.bf16 %v1637_v50  ;;  %v1638_v59 = vunpack.i.l.bf16 %v1637_v50 }
  0xf2   : > { %v769_v5 = vsel %vm2372_vm3, %v1639_v28, %v1638_v59  ;;  %v768_v25 = vsel %vm2372_vm3, %v1638_v59, %v1639_v28 }
  0xf7   : > { %v1617_v34 = vpop.permute.xlu0 %1616 }
  0xf8   : > { %v1619_v38 = vunpack.i.h.bf16 %v1617_v34  ;;  %v1618_v39 = vunpack.i.l.bf16 %v1617_v34 }
  0xfa   : > { %v820_v47 = vsel %vm2369_vm1, %v1618_v39, %v1619_v38  ;;  %v821_v48 = vsel %vm2369_vm1, %v1619_v38, %v1618_v39  ;;  %vm2389_vm1 = vcmp.lt.s32.totalorder %v1894_v63, 240  ;;  %v866_v39 = vrot.slane %v2070_v51, 4 }
  0xfb   : > { %v822_v53 = vsel %vm1922_vm6, %v820_v47, 0.0  ;;  %v823_v56 = vsel %vm1918_vm5, %v821_v48, 0.0  ;;  %v770_v48 = vsel %vm1987_vm15, %v769_v5, 0.0 }
  0xfc   : > { %v882_v10 = vrot.slane %v822_v53, 4  ;;  %v883_v12 = vrot.slane %v823_v56, 4 }
  0xfe   : > { %v896_v11 = vsel %vm739_vm11, %v876_v16, %v882_v10  ;;  %v897_v26 = vsel %vm739_vm11, %v877_v17, %v883_v12 }
 0x107   : > { %v1627_v40 = vpop.permute.xlu1 %1626 }
 0x108   : > { %v1629_v41 = vunpack.i.h.bf16 %v1627_v40  ;;  %v1628_v42 = vunpack.i.l.bf16 %v1627_v40 }
 0x10a   : > { %v847_v49 = vsel %vm683_vm2, %v1629_v41, %v1628_v42  ;;  %v846_v27 = vsel %vm683_vm2, %v1628_v42, %v1629_v41  ;;  %v865_v41 = vrot.slane %v783_v52, 4 }
 0x10b   : > { %v849_v57 = vsel %vm2389_vm1, %v847_v49, 0.0  ;;  %v888_v7 = vrot.slane %v846_v27, 4  ;;  %vm2392_vm1 = vcmp.lt.s32.totalorder %v1891_v58, 111  ;;  %v771_v49 = vsel %vm1943_vm12, %v768_v25, 0.0 }
 0x10c   : > { %v889_v55 = vrot.slane %v849_v57, 4  ;;  %vm2393_vm0 = vmmov %vm2392_vm1  ;;  %v892_v53 = vsel %vm739_vm11, %v770_v48, %v865_v41  ;;  %v893_v57 = vsel %vm739_vm11, %v771_v49, %v866_v39  ;;  %v1237_v39 = vld [vmem:[%s2355_s7] sm:$0xff] }
 0x10d   : > { %v898_v36 = vsel %vm739_vm11, %v835_v21, %v888_v7  ;;  %v1245_v41 = vld [vmem:[%s2356_s8] sm:$0xff] }
 0x10e   : > { %v899_v38 = vsel %vm739_vm11, %v836_v22, %v889_v55  ;;  %v902_v46 = vpack.c.bf16 %v898_v36, %v896_v11 }
 0x10f   : > { %v1642_v60 = vpop.permute.xlu0 %1641  ;;  %v1632_v61 = vpop.permute.xlu1 %1631  ;;  %v903_v47 = vpack.c.bf16 %v899_v38, %v897_v26 }
 0x110   : > { %v1644_v2 = vunpack.i.h.bf16 %v1642_v60  ;;  %v1643_v3 = vunpack.i.l.bf16 %v1642_v60  ;;  %v1634_v4 = vunpack.i.h.bf16 %v1632_v61  ;;  %v1633_v6 = vunpack.i.l.bf16 %v1632_v61  ;;  %v1551_v61 = vld [vmem:[%s2351_s3] sm:$0xff] }
 0x112   : > { %v807_v8 = vsel %vm629_vm10, %v1633_v6, %v1634_v4  ;;  %v808_v9 = vsel %vm629_vm10, %v1634_v4, %v1633_v6  ;;  %v859_v13 = vsel %vm2392_vm1, %v1643_v3, %v1644_v2  ;;  %v860_v14 = vsel %vm2393_vm0, %v1644_v2, %v1643_v3  ;;  %vm2395_vm1 = vmmov %vm2394_vm14 }
 0x113   : > { %v861_v18 = vsel %vm1922_vm6, %v859_v13, 0.0  ;;  %v862_v20 = vsel %vm1932_vm8, %v860_v14, 0.0  ;;  %v809_v31 = vsel %vm1936_vm9, %v808_v9, 0.0  ;;  %v810_v32 = vsel %vm1943_vm12, %v807_v8, 0.0  ;;  %v1002_v13 = vpop.permute.xlu2 %1001 }
 0x114   : > { %v904_v23 = vpack.c.bf16 %v861_v18, %v861_v18  ;;  %v905_v24 = vpack.c.bf16 %v862_v20, %v862_v20  ;;  %v871_v44 = vrot.slane %v809_v31, 4  ;;  %v872_v45 = vrot.slane %v810_v32, 4 }
 0x115   : > { %vm2396_vm0 = vcmp.lt.s32.totalorder %v1891_v58, 15 }
 0x116   : > { %v917_v34 = vsel %vm2394_vm14, %v904_v23, 0  ;;  %v920_v35 = vsel %vm2395_vm1, %v905_v24, 0  ;;  %vm2397_vm14 = vmmov %vm2396_vm0  ;;  %vm2399_vm1 = vcmp.lt.s32.totalorder %v1891_v58, 113 }
 0x117   : > { %v1647_v40 = vpop.permute.xlu0 %1646  ;;  %927 = vmatpush.bf16.msra.mxu0 %v917_v34  ;;  %941 = vmatpush.bf16.msra.mxu1 %v920_v35 }
 0x118   : > { %v1649_v42 = vunpack.i.h.bf16 %v1647_v40  ;;  %v1648_v43 = vunpack.i.l.bf16 %v1647_v40  ;;  %v1333_v40 = vld [vmem:[#allocation2] sm:$0x1] }
 0x11a   : > { %v795_v50 = vsel %vm2396_vm0, %v1649_v42, %v1648_v43  ;;  %v794_v51 = vsel %vm2397_vm14, %v1648_v43, %v1649_v42  ;;  %vm2400_vm0 = vmmov %vm2399_vm1 }
 0x11b   : > { %928 = vmatpush.bf16.msra.mxu0 %v902_v46  ;;  %942 = vmatpush.bf16.msra.mxu1 %v903_v47  ;;  %v796_v52 = vsel %vm2009_vm4, %v795_v50, 0.0  ;;  %v797_v27 = vsel %vm1918_vm5, %v794_v51, 0.0  ;;  %vm2401_vm14 = vmmov %vm2400_vm0 }
 0x11c   : > { %v894_v56 = vsel %vm739_vm11, %v796_v52, %v871_v44  ;;  %v895_v28 = vsel %vm739_vm11, %v797_v27, %v872_v45  ;;  %vm2402_vm3 = vmmov %vm2400_vm0 }
 0x11d   : > { %v900_v59 = vpack.c.bf16 %v894_v56, %v892_v53  ;;  %v901_v60 = vpack.c.bf16 %v895_v28, %v893_v57 }
 0x11f   : > { %929 = vmatpush.bf16.msra.mxu0 %v900_v59  ;;  %943 = vmatpush.bf16.msra.mxu1 %v901_v60 }
 0x122   : > { %1488 = vmatmul.msk.bf16.vlgmr.msra.gmra.mxu0 %vm911_vm7, %v1551_v61  ;;  %1489 = vmatmul.msk.bf16.vlgmr.msra.gmra.mxu1 %vm911_vm7, %v1551_v61  ;;  %vm2398_vm7 = vcmp.lt.s32.totalorder %v1894_v63, 240 }
 0x123   : > { %vm1518_vm11 = vmpackc.low %vm2398_vm7, %vm2398_vm7 }
 0x124   : > { %vm1521_vm7 = vmpackc.low %vm1957_vm13, %vm1957_vm13  ;;  %vm2403_vm13 = vcmp.lt.s32.totalorder %v1891_v58, 127 }
 0x13d   : > { %v1013_v9 = vpop.permute.xlu0 %1012 }
 0x140   : > { %v997_v4 = vpop.permute.xlu1 %996 }
 0x148   : > { %v1018_v24 = vpop.permute.xlu1 %1017 }
 0x15d   : > { %v987_v62 = vpop.f32.mrf.mxu3  ;;  %v973_v0 = vpop.f32.mrf.mxu2 }
 0x165   : > { %v989_v10 = vpop.f32.mrf.mxu3  ;;  %v975_v12 = vpop.f32.mrf.mxu2 }
 0x19f   : > { %v931_v2 = vpop.f32.mrf.mxu0  ;;  %v945_v3 = vpop.f32.mrf.mxu1 }
 0x1a0   : > { %v988_v6 = vadd.f32 %v987_v62, %v945_v3  ;;  %v974_v7 = vadd.f32 %v973_v0, %v931_v2 }
 0x1a2   : > { %v1005_v55 = vmul.f32 %v997_v4, %v988_v6  ;;  %v1004_v8 = vmul.f32 %v997_v4, %v974_v7 }
 0x1a4   : > { %v1020_v20 = vadd.f32 %v1013_v9, %v1004_v8  ;;  %v1021_v21 = vadd.f32 %v1013_v9, %v1005_v55 }
 0x1a6   : > { %v1024_v11 = vmax.f32 %v1020_v20, 0.0  ;;  %v1025_v26 = vmax.f32 %v1021_v21, 0.0 }
 0x1a7   : > { %v933_v14 = vpop.f32.mrf.mxu0  ;;  %v947_v16 = vpop.f32.mrf.mxu1 }
 0x1a8   : > { %v990_v17 = vadd.f32 %v989_v10, %v947_v16  ;;  %v976_v18 = vadd.f32 %v975_v12, %v933_v14 }
 0x1aa   : > { %v1006_v22 = vmul.f32 %v1002_v13, %v976_v18  ;;  %v1007_v23 = vmul.f32 %v1002_v13, %v990_v17 }
 0x1ac   : > { %v1022_v5 = vadd.f32 %v1018_v24, %v1006_v22  ;;  %v1023_v25 = vadd.f32 %v1018_v24, %v1007_v23 }
 0x1ae   : > { %v1026_v31 = vmax.f32 %v1022_v5, 0.0  ;;  %v1027_v32 = vmax.f32 %v1023_v25, 0.0 }
 0x1b0   : > { %v1668_v34 = vpack.i.bf16 %v1027_v32, %v1025_v26  ;;  %v1653_v35 = vpack.i.bf16 %v1026_v31, %v1024_v11  ;;  %v2141_v36 = vpack.c.bf16 %v1026_v31, %v1024_v11  ;;  %v2143_v38 = vpack.c.bf16 %v1027_v32, %v1025_v26 }
 0x1b2   : > { %1669 = vrot.lane.b32.xlu0 %v1668_v34, %s1757_s27  ;;  %1659 = vrot.lane.b32.xlu1 %v1668_v34, %s1759_s29 }
 0x1b3   : > { %1654 = vrot.lane.b32.xlu2 %v1653_v35, %s1759_s29 }
 0x1ba   : > { %1684 = vrot.lane.b32.xlu0 %v1653_v35, %s1762_s14  ;;  %1674 = vrot.lane.b32.xlu1 %v1653_v35, %s1756_s26 }
 0x1bb   : > { %1664 = vrot.lane.b32.xlu2 %v1653_v35, %s1757_s27 }
 0x1c2   : > { %1699 = vrot.lane.b32.xlu0 %v1668_v34, %s1761_s19  ;;  %1689 = vrot.lane.b32.xlu1 %v1668_v34, %s1762_s14 }
 0x1c3   : > { %1679 = vrot.lane.b32.xlu2 %v1668_v34, %s1756_s26 }
 0x1ca   : > { %1714 = vrot.lane.b32.xlu0 %v1653_v35, %s1755_s25  ;;  %1704 = vrot.lane.b32.xlu1 %v1653_v35, %s1758_s28 }
 0x1cb   : > { %1694 = vrot.lane.b32.xlu2 %v1653_v35, %s1761_s19 }
 0x1d2   : > { %1729 = vrot.lane.b32.xlu0 %v1668_v34, %s1760_s18  ;;  %1719 = vrot.lane.b32.xlu1 %v1668_v34, %s1755_s25 }
 0x1d3   : > { %1709 = vrot.lane.b32.xlu2 %v1668_v34, %s1758_s28 }
 0x1da   : > { %1240 = vperm.xlu1 %1650, %v1237_v39  }
 0x1db   : > { %1724 = vrot.lane.b32.xlu2 %v1653_v35, %s1760_s18  ;;  %s1549_s18 = sshll.u32 %s2425_s21, 3 }
 0x1dc   : > { %s516_s23 = scalar_lea.vmem %s2363_s15, %s1549_s18 }
 0x1e2   : > { %1336 = vperm.xlu1 %1650, %v1333_v40  }
 0x1e3   : > { %1248 = vperm.xlu2 %1651, %v1245_v41  }
 0x20d   : > { %v1655_v42 = vpop.permute.xlu2 %1654 }
 0x20e   : > { %v1657_v45 = vunpack.i.h.bf16 %v1655_v42  ;;  %v1656_v46 = vunpack.i.l.bf16 %v1655_v42 }
 0x215   : > { %v1665_v43 = vpop.permute.xlu2 %1664 }
 0x216   : > { %v1667_v27 = vunpack.i.h.bf16 %v1665_v43  ;;  %v1666_v53 = vunpack.i.l.bf16 %v1665_v43 }
 0x21d   : > { %v1680_v44 = vpop.permute.xlu2 %1679 }
 0x21e   : > { %v1682_v10 = vunpack.i.h.bf16 %v1680_v44  ;;  %v1681_v12 = vunpack.i.l.bf16 %v1680_v44 }
 0x224   : > { %v1670_v47 = vpop.permute.xlu0 %1669  ;;  %v1660_v48 = vpop.permute.xlu1 %1659 }
 0x225   : > { %v1672_v49 = vunpack.i.h.bf16 %v1670_v47  ;;  %v1671_v50 = vunpack.i.l.bf16 %v1670_v47  ;;  %v1662_v51 = vunpack.i.h.bf16 %v1660_v48  ;;  %v1661_v52 = vunpack.i.l.bf16 %v1660_v48  ;;  %v1695_v55 = vpop.permute.xlu2 %1694 }
 0x226   : > { %v1697_v26 = vunpack.i.h.bf16 %v1695_v55  ;;  %v1696_v31 = vunpack.i.l.bf16 %v1695_v55 }
 0x227   : > { %v1133_v56 = vsel %vm683_vm2, %v1656_v46, %v1661_v52  ;;  %v1134_v57 = vsel %vm683_vm2, %v1657_v45, %v1662_v51  ;;  %v1135_v28 = vsel %vm683_vm2, %v1661_v52, %v1656_v46  ;;  %v1136_v59 = vsel %vm683_vm2, %v1662_v51, %v1657_v45  ;;  %vm1496_vm2 = vmpackc.low %vm1936_vm9, %vm1936_vm9 }
 0x228   : > { %v1171_v60 = vpack.c.bf16 %v1134_v57, %v1133_v56  ;;  %v1519_v61 = vpack.c.bf16 %v1136_v59, %v1135_v28  ;;  %v1117_v62 = vsel %vm2399_vm1, %v1666_v53, %v1671_v50  ;;  %v1118_v0 = vsel %vm2400_vm0, %v1667_v27, %v1672_v49 }
 0x229   : > { %v1119_v2 = vsel %vm2401_vm14, %v1671_v50, %v1666_v53  ;;  %v1120_v3 = vsel %vm2402_vm3, %v1672_v49, %v1667_v27  ;;  %v1497_v6 = vpack.c.bf16 %v1118_v0, %v1117_v62  ;;  %vm1499_vm3 = vmpackc.low %vm1922_vm6, %vm1922_vm6  ;;  %vm2411_vm9 = vcmp.lt.s32.totalorder %v1891_v58, 16 }
 0x22a   : > { %1185 = vmatpush.bf16.msrb.mxu0 %v1171_v60  ;;  %1520 = vmatpush.bf16.msk.msrb.mxu2 %vm1518_vm11, %v1519_v61  ;;  %v1522_v7 = vpack.c.bf16 %v1120_v3, %v1119_v2  ;;  %vm2404_vm11 = vmmov %vm2403_vm13  ;;  %v1176_v59 = vunpack.c.l.b16 %v1028_v15  ;;  %v1177_v60 = vunpack.c.h.b16 %v1028_v15  ;;  %vm1270_vm6 = vcmask 64512  }
 0x22b   : > { %vm2405_vm1 = vmmov %vm2404_vm11 }
 0x22c   : > { %v1685_v63 = vpop.permute.xlu0 %1684  ;;  %v1675_v4 = vpop.permute.xlu1 %1674  ;;  %vm2406_vm0 = vmmov %vm2405_vm1 }
 0x22d   : > { %v1677_v8 = vunpack.i.h.bf16 %v1675_v4  ;;  %v1676_v9 = vunpack.i.l.bf16 %v1675_v4  ;;  %vm1524_vm14 = vmpackc.low %vm1918_vm5, %vm1918_vm5  ;;  %v1687_v20 = vunpack.i.h.bf16 %v1685_v63  ;;  %v1686_v21 = vunpack.i.l.bf16 %v1685_v63  ;;  %v1710_v32 = vpop.permute.xlu2 %1709 }
 0x22e   : > { %1498 = vmatpush.bf16.msk.msrb.mxu0 %vm1496_vm2, %v1497_v6  ;;  %1523 = vmatpush.bf16.msk.msrb.mxu2 %vm1521_vm7, %v1522_v7  ;;  %vm1527_vm7 = vmpackc.low %vm1943_vm12, %vm1943_vm12  ;;  %v1712_v49 = vunpack.i.h.bf16 %v1710_v32  ;;  %v1711_v50 = vunpack.i.l.bf16 %v1710_v32  ;;  %vm2416_vm5 = vcmp.lt.s32.totalorder %v1891_v58, 17 }
 0x22f   : > { %v1101_v37 = vsel %vm2403_vm13, %v1676_v9, %v1681_v12  ;;  %v1102_v13 = vsel %vm2404_vm11, %v1677_v8, %v1682_v10  ;;  %v1103_v14 = vsel %vm2405_vm1, %v1681_v12, %v1676_v9  ;;  %v1104_v16 = vsel %vm2406_vm0, %v1682_v10, %v1677_v8 }
 0x230   : > { %v1500_v17 = vpack.c.bf16 %v1102_v13, %v1101_v37  ;;  %v1525_v18 = vpack.c.bf16 %v1104_v16, %v1103_v14  ;;  %vm2407_vm13 = vcmp.lt.s32.totalorder %v1891_v58, 15  ;;  %v1178_v12 = vpack.c.b16 %v1176_v59, %v1176_v59 }
 0x231   : > { %vm2408_vm11 = vmmov %vm2407_vm13 }
 0x232   : > { %1501 = vmatpush.bf16.msk.msrb.mxu0 %vm1499_vm3, %v1500_v17  ;;  %1526 = vmatpush.bf16.msk.msrb.mxu2 %vm1524_vm14, %v1525_v18  ;;  %vm2409_vm1 = vmmov %vm2408_vm11 }
 0x233   : > { %vm2410_vm0 = vmmov %vm2409_vm1 }
 0x234   : > { %v1700_v22 = vpop.permute.xlu0 %1699  ;;  %v1690_v23 = vpop.permute.xlu1 %1689 }
 0x235   : > { %v1702_v24 = vunpack.i.h.bf16 %v1700_v22  ;;  %v1701_v5 = vunpack.i.l.bf16 %v1700_v22  ;;  %v1692_v25 = vunpack.i.h.bf16 %v1690_v23  ;;  %v1691_v11 = vunpack.i.l.bf16 %v1690_v23  ;;  %v1725_v28 = vpop.permute.xlu2 %1724 }
 0x236   : > { %1188 = vmatpush.bf16.msrb.mxu0 %v2141_v36  ;;  %1214 = vmatpush.bf16.msrb.mxu2 %v2143_v38  ;;  %v1727_v61 = vunpack.i.h.bf16 %v1725_v28  ;;  %v1726_v62 = vunpack.i.l.bf16 %v1725_v28 }
 0x237   : > { %v1087_v34 = vsel %vm629_vm10, %v1691_v11, %v1686_v21  ;;  %v1088_v35 = vsel %vm629_vm10, %v1692_v25, %v1687_v20  ;;  %v1085_v39 = vsel %vm629_vm10, %v1686_v21, %v1691_v11  ;;  %v1086_v40 = vsel %vm629_vm10, %v1687_v20, %v1692_v25  ;;  %vm1505_vm10 = vmpackc.low %vm2009_vm4, %vm2009_vm4 }
 0x238   : > { %v1503_v36 = vpack.c.bf16 %v1088_v35, %v1087_v34  ;;  %v1528_v41 = vpack.c.bf16 %v1086_v40, %v1085_v39  ;;  %v1071_v38 = vsel %vm2407_vm13, %v1701_v5, %v1696_v31  ;;  %v1072_v42 = vsel %vm2408_vm11, %v1702_v24, %v1697_v26  ;;  %vm2412_vm4 = vmmov %vm2411_vm9 }
 0x239   : > { %v1069_v43 = vsel %vm2409_vm1, %v1696_v31, %v1701_v5  ;;  %v1070_v44 = vsel %vm2410_vm0, %v1697_v26, %v1702_v24  ;;  %v1506_v47 = vpack.c.bf16 %v1072_v42, %v1071_v38  ;;  %vm2414_vm11 = vmmov %vm2412_vm4  ;;  %v1179_v21 = vpack.c.b16 %v1177_v60, %v1177_v60  ;;  %v1302_v60 = vld [vmem:[%s2359_s11] sm:$0xff] }
 0x23a   : > { %1504 = vmatpush.bf16.msk.msrb.mxu0 %vm1496_vm2, %v1503_v36  ;;  %1529 = vmatpush.bf16.msk.msrb.mxu2 %vm1527_vm7, %v1528_v41  ;;  %v1531_v48 = vpack.c.bf16 %v1070_v44, %v1069_v43  ;;  %vm2413_vm2 = vcmp.ge.s32.totalorder %v1891_v58, 16  ;;  %vm2415_vm1 = vmmov %vm2412_vm4  ;;  %v1332_v41 = vld [vmem:[%s2361_s13] sm:$0x1]  ;;  %v1764_v43 = vmov 256.0  }
 0x23b   : > { %vm1508_vm13 = vmpackc.low %vm2413_vm2, %vm2413_vm2  ;;  %1733 = vrcp.f32 %v1764_v43 }
 0x23c   : > { %v1715_v45 = vpop.permute.xlu0 %1714  ;;  %v1705_v46 = vpop.permute.xlu1 %1704  ;;  %vm1511_vm0 = vmpackc.low %vm1987_vm15, %vm1987_vm15 }
 0x23d   : > { %v1707_v51 = vunpack.i.h.bf16 %v1705_v46  ;;  %v1706_v30 = vunpack.i.l.bf16 %v1705_v46  ;;  %v1717_v0 = vunpack.i.h.bf16 %v1715_v45  ;;  %v1716_v2 = vunpack.i.l.bf16 %v1715_v45  ;;  %v1249_v33 = vpop.permute.xlu2 %1248 }
 0x23e   : > { %1507 = vmatpush.bf16.msk.msrb.mxu0 %vm1505_vm10, %v1506_v47  ;;  %1532 = vmatpush.bf16.msk.msrb.mxu2 %vm1524_vm14, %v1531_v48  ;;  %vm2417_vm14 = vmmov %vm2416_vm5  ;;  %vm2418_vm10 = vcmp.lt.s32.totalorder %v1891_v58, 111 }
 0x23f   : > { %v1055_v1 = vsel %vm2411_vm9, %v1711_v50, %v1706_v30  ;;  %v1056_v52 = vsel %vm2412_vm4, %v1712_v49, %v1707_v51  ;;  %v1053_v27 = vsel %vm2414_vm11, %v1706_v30, %v1711_v50  ;;  %v1054_v53 = vsel %vm2415_vm1, %v1707_v51, %v1712_v49  ;;  %vm2419_vm9 = vmmov %vm2418_vm10  ;;  %v1266_v30 = vld [vmem:[%s2357_s9] sm:$0xff] }
 0x240   : > { %v1509_v56 = vpack.c.bf16 %v1056_v52, %v1055_v1  ;;  %v1160_v57 = vpack.c.bf16 %v1054_v53, %v1053_v27  ;;  %vm2420_vm4 = vmmov %vm2416_vm5  ;;  %vm1181_vm1 = vcmask 130048   ;;  %v1267_v1 = vld [vmem:[%s2357_s9 + $0x8] sm:$0xff]  ;;  %v1268_v27 = vld [vmem:[%s2358_s10] sm:$0xff] }
 0x241   : > { %vm2421_vm2 = vmmov %vm2420_vm4  ;;  %v1734_v44 = vpop.eup %1733  ;;  %v1269_v53 = vld [vmem:[%s2358_s10 + $0x8] sm:$0xff] }
 0x242   : > { %1510 = vmatpush.bf16.msk.msrb.mxu0 %vm1508_vm13, %v1509_v56  ;;  %1217 = vmatpush.bf16.msrb.mxu2 %v1160_v57  ;;  %vm2422_vm13 = vmmov %vm2419_vm9  ;;  %v1259_v45 = vmul.f32 256.0, %v1734_v44 }
 0x243   : > { %vm2423_vm15 = vmmov %vm2419_vm9 }
 0x244   : > { %v1730_v3 = vpop.permute.xlu0 %1729  ;;  %v1720_v63 = vpop.permute.xlu1 %1719  ;;  %vm1536_vm11 = vmpackc.low %vm1932_vm8, %vm1932_vm8  ;;  %v1260_v46 = vsub.f32 1.0, %v1259_v45  ;;  %vm1263_vm8 = vweird.f32 %v1734_v44 }
 0x245   : > { %v1732_v4 = vunpack.i.h.bf16 %v1730_v3  ;;  %v1731_v6 = vunpack.i.l.bf16 %v1730_v3  ;;  %v1722_v7 = vunpack.i.h.bf16 %v1720_v63  ;;  %v1721_v10 = vunpack.i.l.bf16 %v1720_v63 }
 0x246   : > { %v1261_v47 = vmul.f32 %v1734_v44, %v1260_v46 }
 0x247   : > { %v1039_v55 = vsel %vm2416_vm5, %v1721_v10, %v1716_v2  ;;  %v1040_v8 = vsel %vm2417_vm14, %v1722_v7, %v1717_v0  ;;  %v1149_v9 = vsel %vm2418_vm10, %v1726_v62, %v1731_v6  ;;  %v1150_v37 = vsel %vm2419_vm9, %v1727_v61, %v1732_v4 }
 0x248   : > { %v1512_v13 = vpack.c.bf16 %v1040_v8, %v1039_v55  ;;  %v1515_v14 = vpack.c.bf16 %v1150_v37, %v1149_v9  ;;  %v1037_v16 = vsel %vm2420_vm4, %v1716_v2, %v1721_v10  ;;  %v1038_v17 = vsel %vm2421_vm2, %v1717_v0, %v1722_v7 }
 0x249   : > { %v1534_v18 = vpack.c.bf16 %v1038_v17, %v1037_v16  ;;  %v1151_v54 = vsel %vm2422_vm13, %v1731_v6, %v1726_v62  ;;  %v1152_v20 = vsel %vm2423_vm15, %v1732_v4, %v1727_v61  ;;  %v1262_v48 = vadd.f32 %v1734_v44, %v1261_v47  ;;  %v1303_v61 = vld [vmem:[%s2360_s12] sm:$0xff] }
 0x24a   : > { %1513 = vmatpush.bf16.msk.msrb.mxu0 %vm1511_vm0, %v1512_v13  ;;  %1516 = vmatpush.bf16.msk.msrb.mxu1 %vm1499_vm3, %v1515_v14  ;;  %v1537_v22 = vpack.c.bf16 %v1152_v20, %v1151_v54 }
 0x24b   : > { %1535 = vmatpush.bf16.msk.msrb.mxu2 %vm1527_vm7, %v1534_v18  ;;  %v1264_v49 = vsel %vm1263_vm8, %v1734_v44, %v1262_v48 }
 0x24c   : > { %1538 = vmatpush.bf16.msk.msrb.mxu3 %vm1536_vm11, %v1537_v22  ;;  %v1241_v23 = vpop.permute.xlu1 %1240 }
 0x24d   : > { %1193 = vmatmul.bf16.vlgmr.msrb.gmra.mxu0 %v1178_v12  ;;  %1517 = vmatmul.msk.bf16.vlgmr.msrb.gmra.mxu1 %vm1181_vm1, %v1179_v21 }
 0x24e   : > { %1219 = vmatmul.bf16.vlgmr.msrb.gmra.mxu2 %v1178_v12 }
 0x24f   : > { %1539 = vmatmul.msk.bf16.vlgmr.msrb.gmra.mxu3 %vm1181_vm1, %v1179_v21 }
 0x254   : > { %v1337_v7 = vpop.permute.xlu1 %1336 }
 0x255   : > { %v1339_v12 = vperm.slane %v1337_v7, 0 }
 0x2ca   : > { %v1194_v58 = vpop.f32.mrf.mxu0  ;;  %v1207_v29 = vpop.f32.mrf.mxu1 }
 0x2cb   : > { %v1208_v19 = vadd.f32 %v1207_v29, %v1194_v58 }
 0x2cd   : > { %v1243_v24 = vmul.f32 %v1241_v23, %v1208_v19 }
 0x2cf   : > { %v1251_v32 = vadd.f32 %v1249_v33, %v1243_v24 }
 0x2d1   : > { %v1220_v5 = vpop.f32.mrf.mxu2  ;;  %v2305_v39 = vmax.f32 %v1251_v32, 0.0 }
 0x2d2   : > { %v1233_v25 = vpop.f32.mrf.mxu3  ;;  %v1196_v11 = vpop.f32.mrf.mxu0 }
 0x2d3   : > { %v1234_v26 = vadd.f32 %v1233_v25, %v1220_v5  ;;  %v1209_v31 = vpop.f32.mrf.mxu1 }
 0x2d5   : > { %v1244_v34 = vmul.f32 %v1241_v23, %v1234_v26 }
 0x2d7   : > { %v1252_v35 = vadd.f32 %v1249_v33, %v1244_v34 }
 0x2d9   : > { %v2307_v40 = vmax.f32 %v1252_v35, 0.0  ;;  %v1222_v36 = vpop.f32.mrf.mxu2 }
 0x2da   : > { %v1235_v38 = vpop.f32.mrf.mxu3 }
 0x2db   : > { %1378 = vmatpush.msra.mxu0 %v2307_v40  ;;  %v1255_v42 = vadd.f32 %v2307_v40, %v2305_v39 }
 0x2dc   : > { %1544 = vmatmul.msk.f32.vlgmr.msra.gmra.mxu0 %vm1270_vm6, %v1332_v41 }
 0x2dd   : > { %1256 = vadd.xlane.f32.xlu0 %v1255_v42 }
 0x350   : > { %v1257_v50 = vpop.xlane.xlu0 %1256 }
 0x351   : > { %v1265_v51 = vmul.f32 %v1264_v49, %v1257_v50 }
 0x353   : > { %1292 = vmatpush.msra.mxu1 %v1265_v51 }
 0x354   : > { %1540 = vmatmul.msk.f32.vlgmr.msra.gmra.mxu1 %vm1270_vm6, %v1266_v30 }
 0x359   : > { %v1380_v10 = vpop.f32.mrf.mxu0 }
 0x35a   : > { %v1381_v8 = vadd.f32 %v1380_v10, %v1339_v12 }
 0x35c   : > { %1541 = vmatmul.msk.f32.gmra.mxu1 %vm1270_vm6, %v1267_v1  ;;  %v1384_v37 = vsub.f32 0.0, %v1381_v8 }
 0x35e   : > { %v1387_v14 = vmul.f32 1.442695, %v1384_v37 }
 0x3d1   : > { %v1294_v52 = vpop.f32.mrf.mxu1 }
 0x3d2   : > { %v1295_v56 = vadd.f32 %v1294_v52, %v1268_v27 }
 0x3d4   : > { %v1300_v59 = vmax.f32 %v1295_v56, 0.0 }
 0x3d9   : > { %v1297_v15 = vpop.f32.mrf.mxu1 }
 0x3da   : > { %v1298_v57 = vadd.f32 %v1297_v15, %v1269_v53 }
 0x3dc   : > { %v1301_v28 = vmax.f32 %v1298_v57, 0.0 }
 0x3de   : > { %1321 = vmatpush.msra.mxu3 %v1301_v28 }
 0x3e0   : > { %1322 = vmatpush.msra.mxu3 %v1300_v59 }
 0x3e1   : > { %1542 = vmatmul.msk.f32.vlgmr.msra.gmra.mxu3 %vm1181_vm1, %v1302_v60 }
 0x3e2   : > { %1358 = vmatpush.msrb.mxu3 %v2305_v39 }
 0x3e9   : > { %1543 = vmatmul.msk.f32.vlgmr.msrb.gmra.mxu3 %vm1270_vm6, %v1332_v41 }
 0x464   : > { %v1324_v62 = vpop.f32.mrf.mxu3 }
 0x465   : > { %v1325_v0 = vadd.f32 %v1324_v62, %v1303_v61 }
 0x467   : > { %v1327_v2 = vsub.f32 0.0, %v1325_v0 }
 0x469   : > { %v1328_v3 = vmul.f32 1.442695, %v1327_v2 }
 0x46b   : > { %1735 = vpow2.f32 %v1328_v3 }
 0x46c   : > { %v1360_v55 = vpop.f32.mrf.mxu3 }
 0x46d   : > { %v1361_v9 = vadd.f32 %v1360_v55, %v1339_v12 }
 0x46f   : > { %v1383_v13 = vsub.f32 0.0, %v1361_v9 }
 0x471   : > { %v1736_v63 = vpop.eup %1735  ;;  %v1385_v16 = vmul.f32 1.442695, %v1383_v13 }
 0x472   : > { %v1330_v4 = vadd.f32 1.0, %v1736_v63 }
 0x474   : > { %1737 = vrcp.f32 %v1330_v4 }
 0x475   : > { %1739 = vpow2.f32 %v1387_v14 }
 0x476   : > { %1741 = vpow2.f32 %v1385_v16 }
 0x47a   : > { %v1738_v6 = vpop.eup %1737 }
 0x47b   : > { %1395 = vperm.xlu2 %1651, %v1738_v6   ;;  %v1740_v17 = vpop.eup %1739 }
 0x47c   : > { %v1742_v18 = vpop.eup %1741  ;;  %v1390_v54 = vadd.f32 1.0, %v1740_v17 }
 0x47d   : > { %v1389_v20 = vadd.f32 1.0, %v1742_v18 }
 0x47e   : > { %1743 = vrcp.f32 %v1390_v54 }
 0x47f   : > { %1745 = vrcp.f32 %v1389_v20 }
 0x484   : > { %v1744_v21 = vpop.eup %1743 }
 0x485   : > { %v1746_v22 = vpop.eup %1745  ;;  %v1399_v29 = vperm.slane %v1744_v21, 0 }
 0x486   : > { %v1398_v58 = vperm.slane %v1746_v22, 0 }
 0x4d5   : > { %v1396_v19 = vpop.permute.xlu2 %1395 }
 0x4d6   : > { %v1400_v23 = vadd.f32 %v1398_v58, %v1396_v19  ;;  %v1401_v24 = vadd.f32 %v1399_v29, %v1396_v19 }
 0x4d8   : > { %v1402_v5 = vmul.f32 %v1400_v23, %v2305_v39  ;;  %v1403_v25 = vmul.f32 %v1401_v24, %v2307_v40 }
 0x4da   : > { %v1404_v11 = vpack.c.bf16 %v1403_v25, %v1402_v5 }
 0x4dc   : > { %1405 = vst [vmem:[%s516_s23] sm:$0xff] %v1404_v11 }
 0x4dd PF: > { %s27_s20 = sadd.s32 1, %s1753_s20  }
 0x4de   : > { %p24_p4 = scmp.ge.s32.totalorder %s27_s20, 4  }
 0x4e0   :  { %26 = sbr.rel (!%p24_p4) target bundleno = 3 (0x3), region = 113 }

</bundles_post_ra>
